<compile_context>
chip_gen: v7x
topology: tpu7x:2x2x1
jax: 0.10.0
libtpu: 0.0.40
codegen_flags: <defaults>
</compile_context>

<pallas_src>
import math

import jax
import jax.numpy as jnp
import numpy as np
from jax.experimental import pallas as pl
from jax.experimental.pallas import tpu as pltpu

LANE = 128


def _round_up(x: int, m: int) -> int:
    return ((x + m - 1) // m) * m


# ----------------------------- fused Pallas kernel ---------------------------

def make_fused_vae_kernel(n_enc: int, n_dec: int, lat_pad: int):
    """Fused VAE forward for one batch tile.

    Ref layout (positional):
      x_ref, eps_ref,
      n_enc * (w, b), head_w, head_b, n_dec * (w, b),
      recon_ref, kld_ref
    Weights are pre-transposed to (in, out) and lane-padded; biases are (1, out).
    """

    def kernel(x_ref, eps_ref, *refs):
        idx = 0
        enc = []
        for _ in range(n_enc):
            enc.append((refs[idx], refs[idx + 1])); idx += 2
        head_w_ref, head_b_ref = refs[idx], refs[idx + 1]; idx += 2
        dec = []
        for _ in range(n_dec):
            dec.append((refs[idx], refs[idx + 1])); idx += 2
        recon_ref, kld_ref = refs[idx], refs[idx + 1]

        # ---- encoder: Linear + ReLU stack (all in vregs) ----
        h = x_ref[...]
        for w_ref, b_ref in enc:
            h = jnp.dot(h, w_ref[...], preferred_element_type=jnp.float32)
            h = jnp.maximum(h + b_ref[...], 0.0)

        # ---- fused mu / log_var head: one matmul over concatenated weights;
        #      split lands on a 128-lane vreg boundary (lat_pad == 128) ----
        heads = jnp.dot(h, head_w_ref[...], preferred_element_type=jnp.float32)
        heads = jnp.maximum(heads + head_b_ref[...], 0.0)   # ReLU on both heads (per spec)
        mu = heads[:, :lat_pad]
        log_var = heads[:, lat_pad:]

        # ---- reparameterize: eps * std + mu (std reused for the KLD below) ----
        std = jnp.exp(0.5 * log_var)
        z = eps_ref[...] * std + mu

        # ---- decoder: Linear + ReLU stack (final layer Linear+ReLU, per spec) ----
        h = z
        for w_ref, b_ref in dec:
            h = jnp.dot(h, w_ref[...], preferred_element_type=jnp.float32)
            h = jnp.maximum(h + b_ref[...], 0.0)
        recon_ref[...] = h.astype(recon_ref.dtype)

        # ---- per-sample KLD; padded latent lanes contribute 1 + 0 - 0 - 1 = 0 ----
        kld_ref[...] = -0.5 * jnp.sum(1.0 + log_var - mu * mu - std * std,
                                      axis=1, keepdims=True)

    return kernel


# ----------------------------- forward wrapper --------------------------------

def vae_forward(padded_params, x, eps, *, input_dim: int, block_batch: int = 128):
    """Fused, batch-tiled VAE forward. Returns (reconstruction, kld_scalar)."""
    enc = padded_params["encoder"]
    dec = padded_params["decoder"]
    head_w = padded_params["head_w"]          # (in_pad, 2*lat_pad)
    head_b = padded_params["head_b"]          # (1, 2*lat_pad)

    n_enc, n_dec = len(enc), len(dec)
    lat_pad = head_w.shape[1] // 2
    in_pad = enc[0][0].shape[0] if n_enc else head_w.shape[0]
    out_pad = dec[-1][0].shape[1]

    batch = x.shape[0]
    tb = min(block_batch, batch)
    assert batch % tb == 0, "batch must be a multiple of the batch tile"
    num_tiles = batch // tb

    # zero-pad x to the lane-padded input width (padded weight rows are zero, so
    # padded features never contribute).
    x_p = jnp.zeros((batch, in_pad), jnp.float32).at[:, : x.shape[1]].set(x)

    flat = []
    for w, b in enc:
        flat += [w, b]
    flat += [head_w, head_b]
    for w, b in dec:
        flat += [w, b]

    def batch_spec(cols):
        return pl.BlockSpec((tb, cols), lambda i: (i, 0))

    def resident_spec(shape):
        # constant index_map -> block fetched once, stays resident across grid steps
        return pl.BlockSpec(shape, lambda i: (0, 0))

    recon_p, kld_per_sample = pl.pallas_call(
        make_fused_vae_kernel(n_enc, n_dec, lat_pad),
        grid=(num_tiles,),
        out_shape=(
            jax.ShapeDtypeStruct((batch, out_pad), jnp.float32),
            jax.ShapeDtypeStruct((batch, 1), jnp.float32),
        ),
        in_specs=[batch_spec(in_pad), batch_spec(lat_pad)]
                 + [resident_spec(a.shape) for a in flat],
        out_specs=(
            batch_spec(out_pad),
            pl.BlockSpec((tb, 1), lambda i: (i, 0)),
        ),
        compiler_params=pltpu.CompilerParams(
            dimension_semantics=("parallel",)),
    )(x_p, eps, *flat)

    recon = recon_p[:, :input_dim]            # drop lane padding
    kld = jnp.mean(kld_per_sample)            # batch mean outside the (parallel) grid
    return recon, kld


vae_forward_jit = jax.jit(vae_forward, static_argnames=("input_dim", "block_batch"))


# ----------------------------- parameter init ---------------------------------

def _init_linear(key, in_dim, out_dim):
    """PyTorch nn.Linear default init, stored pre-transposed as (in, out) / (1, out)."""
    kw, kb = jax.random.split(key)
    bound = 1.0 / math.sqrt(in_dim)
    w = jax.random.uniform(kw, (in_dim, out_dim), jnp.float32, -bound, bound)
    b = jax.random.uniform(kb, (1, out_dim), jnp.float32, -bound, bound)
    return w, b


def init_vae_params(key, input_dim, hidden_dims):
    """Logical (unpadded) parameters, matching the PyTorch module structure."""
    params = {"encoder": [], "decoder": []}
    keys = jax.random.split(key, 2 * len(hidden_dims) + 3)
    ki = 0

    dim = input_dim
    for h in hidden_dims[:-1]:
        params["encoder"].append(_init_linear(keys[ki], dim, h)); ki += 1
        dim = h

    lat = hidden_dims[-1]
    params["w_mu"], params["b_mu"] = _init_linear(keys[ki], dim, lat); ki += 1
    params["w_lv"], params["b_lv"] = _init_linear(keys[ki], dim, lat); ki += 1

    dim = lat
    for h in reversed(hidden_dims[:-1]):
        params["decoder"].append(_init_linear(keys[ki], dim, h)); ki += 1
        dim = h
    params["decoder"].append(_init_linear(keys[ki], dim, input_dim)); ki += 1
    return params


def _pad_linear(w, b, in_pad, out_pad):
    wp = jnp.zeros((in_pad, out_pad), jnp.float32).at[: w.shape[0], : w.shape[1]].set(w)
    bp = jnp.zeros((1, out_pad), jnp.float32).at[:, : b.shape[1]].set(b)
    return wp, bp


def pad_params(params):
    """Zero-pad every feature dim to a multiple of 128 lanes (exactness-preserving)
    and concatenate the mu / log_var head weights into one (in, 2*lat) matrix."""
    padded = {"encoder": [], "decoder": []}
    for w, b in params["encoder"]:
        padded["encoder"].append(_pad_linear(
            w, b, _round_up(w.shape[0], LANE), _round_up(w.shape[1], LANE)))
    in_dim, lat = params["w_mu"].shape
    in_pad, lat_pad = _round_up(in_dim, LANE), _round_up(lat, LANE)
    w_mu, b_mu = _pad_linear(params["w_mu"], params["b_mu"], in_pad, lat_pad)
    w_lv, b_lv = _pad_linear(params["w_lv"], params["b_lv"], in_pad, lat_pad)
    padded["head_w"] = jnp.concatenate([w_mu, w_lv], axis=1)   # (in_pad, 2*lat_pad)
    padded["head_b"] = jnp.concatenate([b_mu, b_lv], axis=1)   # (1, 2*lat_pad)
    for w, b in params["decoder"]:
        padded["decoder"].append(_pad_linear(
            w, b, _round_up(w.shape[0], LANE), _round_up(w.shape[1], LANE)))
    return padded


# ----------------------------- pure-JAX reference ------------------------------

def vae_reference(params, x, eps):
    h = x
    for w, b in params["encoder"]:
        h = jnp.maximum(h @ w + b, 0.0)
    mu = jnp.maximum(h @ params["w_mu"] + params["b_mu"], 0.0)
    log_var = jnp.maximum(h @ params["w_lv"] + params["b_lv"], 0.0)
    h = eps * jnp.exp(0.5 * log_var) + mu
    for w, b in params["decoder"]:
        h = jnp.maximum(h @ w + b, 0.0)
    kld = jnp.mean(-0.5 * jnp.sum(1.0 + log_var - mu ** 2 - jnp.exp(log_var), axis=1))
    return h, kld


# ----------------------------- main --------------------------------------------

if __name__ == "__main__":
    key = jax.random.PRNGKey(0)
    k_param, k_x, k_eps = jax.random.split(key, 3)

    # CTGAN-style dims, lane-padded internally; batch raised so the launch overhead
    # is amortized and the batch grid (2 tiles of 128 rows) is exercised.
    batch = 256
    input_dim = 32
    hidden_dims = [32, 16]   # encoder 32->32, heads 32->16 (x2), decoder 16->32->32

    logical = init_vae_params(k_param, input_dim, hidden_dims)
    padded = pad_params(logical)

    lat = hidden_dims[-1]
    lat_pad = _round_up(lat, LANE)

    x = jax.random.normal(k_x, (batch, input_dim), jnp.float32)
    # eps ~ N(0,1) from a fresh key per forward (torch.randn_like equivalent).
    # Padded latent lanes are inert (decoder rows for them are zero).
    eps = jax.random.normal(k_eps, (batch, lat_pad), jnp.float32)

    recon, kld = vae_forward_jit(padded, x, eps, input_dim=input_dim)
    jax.block_until_ready(recon)
    jax.block_until_ready(kld)

    assert recon.shape == (batch, input_dim)
    assert kld.shape == ()
    assert bool(jnp.all(recon >= 0.0))        # final layer is Linear+ReLU per spec
    assert bool(jnp.isfinite(kld))

    # correctness vs. unpadded pure-JAX reference (loose tol: MXU f32 matmul passes)
    ref_recon, ref_kld = vae_reference(logical, x, eps[:, :lat])
    np.testing.assert_allclose(np.asarray(recon), np.asarray(ref_recon),
                               rtol=5e-2, atol=5e-2)
    np.testing.assert_allclose(float(kld), float(ref_kld), rtol=5e-2, atol=5e-2)

    print("KERNEL_OK")
</pallas_src>

<mosaic_0001>
module attributes {stable_mosaic.version = 11 : i64} {
  func.func @kernel(%arg0: i32, %arg1: memref<128x128xf32, #tpu.memory_space<vmem>>, %arg2: memref<128x128xf32, #tpu.memory_space<vmem>>, %arg3: memref<128x128xf32, #tpu.memory_space<vmem>>, %arg4: memref<1x128xf32, #tpu.memory_space<vmem>>, %arg5: memref<128x256xf32, #tpu.memory_space<vmem>>, %arg6: memref<1x256xf32, #tpu.memory_space<vmem>>, %arg7: memref<128x128xf32, #tpu.memory_space<vmem>>, %arg8: memref<1x128xf32, #tpu.memory_space<vmem>>, %arg9: memref<128x128xf32, #tpu.memory_space<vmem>>, %arg10: memref<1x128xf32, #tpu.memory_space<vmem>>, %arg11: memref<128x128xf32, #tpu.memory_space<vmem>>, %arg12: memref<128x1xf32, #tpu.memory_space<vmem>>) attributes {dimension_semantics = [#tpu.dimension_semantics<parallel>], iteration_bounds = array<i64: 2>, scalar_prefetch = 0 : i64, scratch_operands = 0 : i64, tpu.core_type = #tpu.core_type<tc>, window_params = [{transform_indices = @transform_0, window_bounds = array<i64: 128, 128>}, {transform_indices = @transform_1, window_bounds = array<i64: 128, 128>}, {pipeline_mode = #tpu.pipeline_mode<synchronous>, transform_indices = @transform_2, window_bounds = array<i64: 128, 128>}, {pipeline_mode = #tpu.pipeline_mode<synchronous>, transform_indices = @transform_3, window_bounds = array<i64: 1, 128>}, {pipeline_mode = #tpu.pipeline_mode<synchronous>, transform_indices = @transform_4, window_bounds = array<i64: 128, 256>}, {pipeline_mode = #tpu.pipeline_mode<synchronous>, transform_indices = @transform_5, window_bounds = array<i64: 1, 256>}, {pipeline_mode = #tpu.pipeline_mode<synchronous>, transform_indices = @transform_6, window_bounds = array<i64: 128, 128>}, {pipeline_mode = #tpu.pipeline_mode<synchronous>, transform_indices = @transform_7, window_bounds = array<i64: 1, 128>}, {pipeline_mode = #tpu.pipeline_mode<synchronous>, transform_indices = @transform_8, window_bounds = array<i64: 128, 128>}, {pipeline_mode = #tpu.pipeline_mode<synchronous>, transform_indices = @transform_9, window_bounds = array<i64: 1, 128>}, {transform_indices = @transform_10, window_bounds = array<i64: 128, 128>}, {transform_indices = @transform_11, window_bounds = array<i64: 128, 1>}]} {
    %c0 = arith.constant 0 : index
    %c0_0 = arith.constant 0 : index
    %0 = vector.load %arg1[%c0, %c0_0] : memref<128x128xf32, #tpu.memory_space<vmem>>, vector<128x128xf32>
    %c0_1 = arith.constant 0 : index
    %c0_2 = arith.constant 0 : index
    %1 = vector.load %arg3[%c0_1, %c0_2] : memref<128x128xf32, #tpu.memory_space<vmem>>, vector<128x128xf32>
    %cst = arith.constant dense<0.000000e+00> : vector<128x128xf32>
    %2 = tpu.matmul %0, %1, %cst {dimension_numbers = #tpu.dot_dimension_numbers<[1], [0], [0], [1], [0, 0, 1, 1], [], []>} : vector<128x128xf32>, vector<128x128xf32>, vector<128x128xf32> -> vector<128x128xf32>
    %c0_3 = arith.constant 0 : index
    %c0_4 = arith.constant 0 : index
    %3 = vector.load %arg4[%c0_3, %c0_4] : memref<1x128xf32, #tpu.memory_space<vmem>>, vector<1x128xf32>
    %4 = vector.broadcast %3 : vector<1x128xf32> to vector<128x128xf32>
    %5 = arith.addf %2, %4 : vector<128x128xf32>
    %cst_5 = arith.constant 0.000000e+00 : f32
    %6 = vector.broadcast %cst_5 : f32 to vector<128x128xf32>
    %7 = arith.maximumf %5, %6 : vector<128x128xf32>
    %c0_6 = arith.constant 0 : index
    %c0_7 = arith.constant 0 : index
    %8 = vector.load %arg5[%c0_6, %c0_7] : memref<128x256xf32, #tpu.memory_space<vmem>>, vector<128x256xf32>
    %cst_8 = arith.constant dense<0.000000e+00> : vector<128x256xf32>
    %9 = tpu.matmul %7, %8, %cst_8 {dimension_numbers = #tpu.dot_dimension_numbers<[1], [0], [0], [1], [0, 0, 1, 1], [], []>} : vector<128x128xf32>, vector<128x256xf32>, vector<128x256xf32> -> vector<128x256xf32>
    %c0_9 = arith.constant 0 : index
    %c0_10 = arith.constant 0 : index
    %10 = vector.load %arg6[%c0_9, %c0_10] : memref<1x256xf32, #tpu.memory_space<vmem>>, vector<1x256xf32>
    %11 = vector.broadcast %10 : vector<1x256xf32> to vector<128x256xf32>
    %12 = arith.addf %9, %11 : vector<128x256xf32>
    %cst_11 = arith.constant 0.000000e+00 : f32
    %13 = vector.broadcast %cst_11 : f32 to vector<128x256xf32>
    %14 = arith.maximumf %12, %13 : vector<128x256xf32>
    %15 = vector.extract_strided_slice %14 {offsets = [0, 0], sizes = [128, 128], strides = [1, 1]} : vector<128x256xf32> to vector<128x128xf32>
    %16 = vector.extract_strided_slice %14 {offsets = [0, 128], sizes = [128, 128], strides = [1, 1]} : vector<128x256xf32> to vector<128x128xf32>
    %cst_12 = arith.constant 5.000000e-01 : f32
    %17 = vector.broadcast %cst_12 : f32 to vector<128x128xf32>
    %18 = arith.mulf %17, %16 : vector<128x128xf32>
    %19 = math.exp %18 : vector<128x128xf32>
    %c0_13 = arith.constant 0 : index
    %c0_14 = arith.constant 0 : index
    %20 = vector.load %arg2[%c0_13, %c0_14] : memref<128x128xf32, #tpu.memory_space<vmem>>, vector<128x128xf32>
    %21 = arith.mulf %20, %19 : vector<128x128xf32>
    %22 = arith.addf %21, %15 : vector<128x128xf32>
    %c0_15 = arith.constant 0 : index
    %c0_16 = arith.constant 0 : index
    %23 = vector.load %arg7[%c0_15, %c0_16] : memref<128x128xf32, #tpu.memory_space<vmem>>, vector<128x128xf32>
    %cst_17 = arith.constant dense<0.000000e+00> : vector<128x128xf32>
    %24 = tpu.matmul %22, %23, %cst_17 {dimension_numbers = #tpu.dot_dimension_numbers<[1], [0], [0], [1], [0, 0, 1, 1], [], []>} : vector<128x128xf32>, vector<128x128xf32>, vector<128x128xf32> -> vector<128x128xf32>
    %c0_18 = arith.constant 0 : index
    %c0_19 = arith.constant 0 : index
    %25 = vector.load %arg8[%c0_18, %c0_19] : memref<1x128xf32, #tpu.memory_space<vmem>>, vector<1x128xf32>
    %26 = vector.broadcast %25 : vector<1x128xf32> to vector<128x128xf32>
    %27 = arith.addf %24, %26 : vector<128x128xf32>
    %cst_20 = arith.constant 0.000000e+00 : f32
    %28 = vector.broadcast %cst_20 : f32 to vector<128x128xf32>
    %29 = arith.maximumf %27, %28 : vector<128x128xf32>
    %c0_21 = arith.constant 0 : index
    %c0_22 = arith.constant 0 : index
    %30 = vector.load %arg9[%c0_21, %c0_22] : memref<128x128xf32, #tpu.memory_space<vmem>>, vector<128x128xf32>
    %cst_23 = arith.constant dense<0.000000e+00> : vector<128x128xf32>
    %31 = tpu.matmul %29, %30, %cst_23 {dimension_numbers = #tpu.dot_dimension_numbers<[1], [0], [0], [1], [0, 0, 1, 1], [], []>} : vector<128x128xf32>, vector<128x128xf32>, vector<128x128xf32> -> vector<128x128xf32>
    %c0_24 = arith.constant 0 : index
    %c0_25 = arith.constant 0 : index
    %32 = vector.load %arg10[%c0_24, %c0_25] : memref<1x128xf32, #tpu.memory_space<vmem>>, vector<1x128xf32>
    %33 = vector.broadcast %32 : vector<1x128xf32> to vector<128x128xf32>
    %34 = arith.addf %31, %33 : vector<128x128xf32>
    %cst_26 = arith.constant 0.000000e+00 : f32
    %35 = vector.broadcast %cst_26 : f32 to vector<128x128xf32>
    %36 = arith.maximumf %34, %35 : vector<128x128xf32>
    %c0_27 = arith.constant 0 : index
    %c0_28 = arith.constant 0 : index
    %37 = vector.load %arg11[%c0_27, %c0_28] : memref<128x128xf32, #tpu.memory_space<vmem>>, vector<128x128xf32>
    tpu.vector_store %arg11[%c0_27, %c0_28], %36 {strides = array<i32>} : memref<128x128xf32, #tpu.memory_space<vmem>>, vector<128x128xf32>,
    %cst_29 = arith.constant 1.000000e+00 : f32
    %38 = vector.broadcast %cst_29 : f32 to vector<128x128xf32>
    %39 = arith.addf %38, %16 : vector<128x128xf32>
    %40 = arith.mulf %15, %15 : vector<128x128xf32>
    %41 = arith.subf %39, %40 : vector<128x128xf32>
    %42 = arith.mulf %19, %19 : vector<128x128xf32>
    %43 = arith.subf %41, %42 : vector<128x128xf32>
    %cst_30 = arith.constant dense<0.000000e+00> : vector<128xf32>
    %44 = vector.multi_reduction <add>, %43, %cst_30 [1] : vector<128x128xf32> to vector<128xf32>
    %45 = vector.shape_cast %44 : vector<128xf32> to vector<128x1xf32>
    %cst_31 = arith.constant -5.000000e-01 : f32
    %46 = vector.broadcast %cst_31 : f32 to vector<128x1xf32>
    %47 = arith.mulf %46, %45 : vector<128x1xf32>
    %c0_32 = arith.constant 0 : index
    %c0_33 = arith.constant 0 : index
    %48 = vector.load %arg12[%c0_32, %c0_33] : memref<128x1xf32, #tpu.memory_space<vmem>>, vector<128x1xf32>
    tpu.vector_store %arg12[%c0_32, %c0_33], %47 {strides = array<i32>} : memref<128x1xf32, #tpu.memory_space<vmem>>, vector<128x1xf32>,
    return
  }
  func.func @transform_0(%arg0: i32) -> (i32, i32) {
    %c0_i32 = arith.constant 0 : i32
    %c0_i32_0 = arith.constant 0 : i32
    return %arg0, %c0_i32 : i32, i32
  }
  func.func @transform_1(%arg0: i32) -> (i32, i32) {
    %c0_i32 = arith.constant 0 : i32
    %c0_i32_0 = arith.constant 0 : i32
    return %arg0, %c0_i32 : i32, i32
  }
  func.func @transform_2(%arg0: i32) -> (i32, i32) {
    %c0_i32 = arith.constant 0 : i32
    %c0_i32_0 = arith.constant 0 : i32
    %c0_i32_1 = arith.constant 0 : i32
    return %c0_i32, %c0_i32_0 : i32, i32
  }
  func.func @transform_3(%arg0: i32) -> (i32, i32) {
    %c0_i32 = arith.constant 0 : i32
    %c0_i32_0 = arith.constant 0 : i32
    %c0_i32_1 = arith.constant 0 : i32
    return %c0_i32, %c0_i32_0 : i32, i32
  }
  func.func @transform_4(%arg0: i32) -> (i32, i32) {
    %c0_i32 = arith.constant 0 : i32
    %c0_i32_0 = arith.constant 0 : i32
    %c0_i32_1 = arith.constant 0 : i32
    return %c0_i32, %c0_i32_0 : i32, i32
  }
  func.func @transform_5(%arg0: i32) -> (i32, i32) {
    %c0_i32 = arith.constant 0 : i32
    %c0_i32_0 = arith.constant 0 : i32
    %c0_i32_1 = arith.constant 0 : i32
    return %c0_i32, %c0_i32_0 : i32, i32
  }
  func.func @transform_6(%arg0: i32) -> (i32, i32) {
    %c0_i32 = arith.constant 0 : i32
    %c0_i32_0 = arith.constant 0 : i32
    %c0_i32_1 = arith.constant 0 : i32
    return %c0_i32, %c0_i32_0 : i32, i32
  }
  func.func @transform_7(%arg0: i32) -> (i32, i32) {
    %c0_i32 = arith.constant 0 : i32
    %c0_i32_0 = arith.constant 0 : i32
    %c0_i32_1 = arith.constant 0 : i32
    return %c0_i32, %c0_i32_0 : i32, i32
  }
  func.func @transform_8(%arg0: i32) -> (i32, i32) {
    %c0_i32 = arith.constant 0 : i32
    %c0_i32_0 = arith.constant 0 : i32
    %c0_i32_1 = arith.constant 0 : i32
    return %c0_i32, %c0_i32_0 : i32, i32
  }
  func.func @transform_9(%arg0: i32) -> (i32, i32) {
    %c0_i32 = arith.constant 0 : i32
    %c0_i32_0 = arith.constant 0 : i32
    %c0_i32_1 = arith.constant 0 : i32
    return %c0_i32, %c0_i32_0 : i32, i32
  }
  func.func @transform_10(%arg0: i32) -> (i32, i32) {
    %c0_i32 = arith.constant 0 : i32
    %c0_i32_0 = arith.constant 0 : i32
    return %arg0, %c0_i32 : i32, i32
  }
  func.func @transform_11(%arg0: i32) -> (i32, i32) {
    %c0_i32 = arith.constant 0 : i32
    %c0_i32_0 = arith.constant 0 : i32
    return %arg0, %c0_i32 : i32, i32
  }
}

</mosaic_0001>

<bundles_post_ra>
// kernel: vae_forward.1
= control target key start
LH: loop header
LB: loop body
LE: loop exit
PB: predicated region body
PF: predicated region fallthrough
CT: control target
= control target key end

     0   :  { %s2126_s17 = smov 0   ;;  %s2745_s0 = inlined_call_operand.vmem [shape: f32[256,128], index: 0, kind: input, shape index: {}]   ;;  %s2746_s1 = inlined_call_operand.vmem [shape: f32[256,128], index: 1, kind: input, shape index: {}]   ;;  %s2747_s2 = inlined_call_operand.vmem [shape: f32[128,128], index: 2, kind: input, shape index: {}]   ;;  %s2748_s3 = inlined_call_operand.vmem [shape: f32[1,128], index: 3, kind: input, shape index: {}]   ;;  %s2749_s4 = inlined_call_operand.vmem [shape: f32[128,256], index: 4, kind: input, shape index: {}]   ;;  %s2750_s5 = inlined_call_operand.vmem [shape: f32[1,256], index: 5, kind: input, shape index: {}]   ;;  %s2751_s6 = inlined_call_operand.vmem [shape: f32[128,128], index: 6, kind: input, shape index: {}]   ;;  %s2752_s7 = inlined_call_operand.vmem [shape: f32[1,128], index: 7, kind: input, shape index: {}]   ;;  %s2753_s8 = inlined_call_operand.vmem [shape: f32[128,128], index: 8, kind: input, shape index: {}]   ;;  %s2754_s9 = inlined_call_operand.vmem [shape: f32[1,128], index: 9, kind: input, shape index: {}]   ;;  %s2755_s10 = inlined_call_operand.vmem [shape: f32[256,128], index: 10, kind: output, shape index: {0}]   ;;  %s2756_s11 = inlined_call_operand.vmem [shape: f32[256,1], index: 11, kind: output, shape index: {1}]  }
   0x1 LB: > { %s1590_s18 = sadd.s32 4294967295, %s2063_s17   ;;  %p1594_p0 = scmp.ge.s32.totalorder %s2063_s17, 1  ;;  %s2063_s17 = sphi %s2126_s17, %s22_s17  }
   0x2   : > { %p352_p1 = scmp.lt.s32.totalorder %s2063_s17, 3 }
   0x4   : > { %p353_p2 = pnand %p1594_p0, %p352_p1 }
   0x5   : > { %v442_v0 = vld [vmem:[%s2747_s2] sm:$0xff] (!%p353_p2)  ;;  %v443_v1 = vld [vmem:[%s2747_s2 + $0x8] sm:$0xff] (!%p353_p2)  ;;  %v444_v2 = vld [vmem:[%s2747_s2 + $0x10] sm:$0xff] (!%p353_p2)  ;;  %s1595_s25 = sshll.u32 (!%p353_p2), %s1590_s18, 4  ;;  %vm1471_vm0 = vcmask (!%p353_p2), 7168  }
   0x6   : > { %356 = sbr.rel (%p353_p2) target bundleno = 989 (0x3dd), region = 60  ;;  %v1872_v3 = vpack.c.bf16 (!%p353_p2), %v443_v1, %v442_v0  ;;  %v445_v4 = vld [vmem:[%s2747_s2 + $0x18] sm:$0xff] (!%p353_p2)  ;;  %p403_p3 = scmp.lt.s32.totalorder (!%p353_p2), %s1595_s25, 31  ;;  %v446_v6 = vld [vmem:[%s2747_s2 + $0x20] sm:$0xff] (!%p353_p2)  ;;  %v447_v7 = vld [vmem:[%s2747_s2 + $0x28] sm:$0xff] (!%p353_p2) }
   0x7   : > { %v1876_v5 = vpack.c.bf16 (!%p353_p2), %v445_v4, %v444_v2  ;;  %v1880_v8 = vpack.c.bf16 (!%p353_p2), %v447_v7, %v446_v6  ;;  %v448_v9 = vld [vmem:[%s2747_s2 + $0x30] sm:$0xff] (!%p353_p2)  ;;  %v627_v10 = vld [vmem:[%s2749_s4 + $0x8] sm:$0xff] (!%p353_p2)  ;;  %v629_v11 = vld [vmem:[%s2749_s4 + $0x18] sm:$0xff] (!%p353_p2) }
   0x8   : > { %1873 = vmatprep.subr.bf16.mxu0 (!%p353_p2), %v1872_v3  ;;  %v449_v12 = vld [vmem:[%s2747_s2 + $0x38] sm:$0xff] (!%p353_p2)  ;;  %v1904_v13 = vpack.c.bf16 (!%p353_p2), %v629_v11, %v627_v10  ;;  %v626_v14 = vld [vmem:[%s2749_s4] sm:$0xff] (!%p353_p2)  ;;  %v628_v15 = vld [vmem:[%s2749_s4 + $0x10] sm:$0xff] (!%p353_p2) }
   0x9   : > { %1875 = vmatpush3.bf16.msra.mxu0 (!%p353_p2), %v1872_v3  ;;  %v1906_v17 = vpack.c.bf16 (!%p353_p2), %v628_v15, %v626_v14  ;;  %v1884_v18 = vpack.c.bf16 (!%p353_p2), %v449_v12, %v448_v9  ;;  %v450_v19 = vld [vmem:[%s2747_s2 + $0x40] sm:$0xff] (!%p353_p2)  ;;  %v451_v20 = vld [vmem:[%s2747_s2 + $0x48] sm:$0xff] (!%p353_p2)  ;;  %v452_v22 = vld [vmem:[%s2747_s2 + $0x50] sm:$0xff] (!%p353_p2) }
   0xa   : > { %1877 = vmatprep.subr.bf16.mxu0 (!%p353_p2), %v1876_v5  ;;  %1905 = vmatprep.subr.bf16.mxu1 (!%p353_p2), %v1904_v13  ;;  %v631_v21 = vld [vmem:[%s2749_s4 + $0x28] sm:$0xff] (!%p353_p2)  ;;  %v453_v23 = vld [vmem:[%s2747_s2 + $0x58] sm:$0xff] (!%p353_p2)  ;;  %v630_v25 = vld [vmem:[%s2749_s4 + $0x20] sm:$0xff] (!%p353_p2)  ;;  %v1888_v26 = vpack.c.bf16 (!%p353_p2), %v451_v20, %v450_v19 }
   0xb   : > { %1907 = vmatpush1.bf16.msra.mxu1 (!%p353_p2), %v1906_v17  ;;  %v633_v24 = vld [vmem:[%s2749_s4 + $0x38] sm:$0xff] (!%p353_p2)  ;;  %v632_v28 = vld [vmem:[%s2749_s4 + $0x30] sm:$0xff] (!%p353_p2)  ;;  %v635_v29 = vld [vmem:[%s2749_s4 + $0x48] sm:$0xff] (!%p353_p2)  ;;  %v1892_v38 = vpack.c.bf16 (!%p353_p2), %v453_v23, %v452_v22 }
   0xc   : > { %v1908_v27 = vpack.c.bf16 (!%p353_p2), %v633_v24, %v631_v21  ;;  %v637_v30 = vld [vmem:[%s2749_s4 + $0x58] sm:$0xff] (!%p353_p2)  ;;  %v1910_v31 = vpack.c.bf16 (!%p353_p2), %v632_v28, %v630_v25  ;;  %v634_v33 = vld [vmem:[%s2749_s4 + $0x40] sm:$0xff] (!%p353_p2)  ;;  %v636_v34 = vld [vmem:[%s2749_s4 + $0x50] sm:$0xff] (!%p353_p2)  ;;  %v2065_v24 = vmov (!%p353_p2), 0.0  }
   0xd   : > { %s2758_s25 = smov (!%p403_p3, %s1595_s25), 31  ;;  %1879 = vmatpush3.bf16.msra.mxu0 %v1876_v5  ;;  %v1912_v32 = vpack.c.bf16 %v637_v30, %v635_v29  ;;  %v639_v35 = vld [vmem:[%s2749_s4 + $0x68] sm:$0xff]  ;;  %v641_v36 = vld [vmem:[%s2749_s4 + $0x78] sm:$0xff]  ;;  %v1914_v37 = vpack.c.bf16 %v636_v34, %v634_v33  ;;  %v454_v39 = vld [vmem:[%s2747_s2 + $0x60] sm:$0xff]  ;;  %734 = vmatprep.mubr.f32.mxu1 %v2065_v24 }
   0xe   : > { %s2155_s15 = sshll.u32 %s2758_s25, 3  ;;  %1881 = vmatprep.subr.bf16.mxu0 %v1880_v8  ;;  %1909 = vmatprep.subr.bf16.mxu1 %v1908_v27  ;;  %v1916_v40 = vpack.c.bf16 %v641_v36, %v639_v35  ;;  %v638_v41 = vld [vmem:[%s2749_s4 + $0x60] sm:$0xff]  ;;  %v640_v42 = vld [vmem:[%s2749_s4 + $0x70] sm:$0xff]  ;;  %v455_v43 = vld [vmem:[%s2747_s2 + $0x68] sm:$0xff] }
   0xf   : > { %s2170_s26 = scalar_lea.vmem %s2745_s0, %s2155_s15  ;;  %1911 = vmatpush1.bf16.msra.mxu1 %v1910_v31  ;;  %v643_v44 = vld [vmem:[%s2749_s4 + $0x88] sm:$0xff]  ;;  %v645_v45 = vld [vmem:[%s2749_s4 + $0x98] sm:$0xff]  ;;  %v1918_v46 = vpack.c.bf16 %v640_v42, %v638_v41  ;;  %v1896_v47 = vpack.c.bf16 %v455_v43, %v454_v39  ;;  %v456_v48 = vld [vmem:[%s2747_s2 + $0x70] sm:$0xff]  ;;  %s2430_s24 = scalar_lea.vmem %s2746_s1, %s2155_s15 }
  0x10   : > { %v426_v16 = vld [vmem:[%s2170_s26] sm:$0xff]  ;;  %1913 = vmatprep.subr.bf16.mxu1 %v1912_v32  ;;  %v1920_v49 = vpack.c.bf16 %v645_v45, %v643_v44  ;;  %v644_v51 = vld [vmem:[%s2749_s4 + $0x90] sm:$0xff]  ;;  %v457_v52 = vld [vmem:[%s2747_s2 + $0x78] sm:$0xff]  ;;  %s2680_s25 = scalar_lea.vmem %s2756_s11, %s2155_s15  ;;  %s2724_s14 = scalar_lea.vmem %s2755_s10, %s2155_s15 }
  0x11   : > { %1736 = vmatprep.mubr.f32.mxu0 %v426_v16  ;;  %1883 = vmatpush3.bf16.msra.mxu0 %v1880_v8  ;;  %v642_v50 = vld [vmem:[%s2749_s4 + $0x80] sm:$0xff]  ;;  %v647_v53 = vld [vmem:[%s2749_s4 + $0xa8] sm:$0xff]  ;;  %v649_v54 = vld [vmem:[%s2749_s4 + $0xb8] sm:$0xff]  ;;  %v1900_v56 = vpack.c.bf16 %v457_v52, %v456_v48 }
  0x12   : > { %1885 = vmatprep.subr.bf16.mxu0 %v1884_v18  ;;  %v1922_v55 = vpack.c.bf16 %v644_v51, %v642_v50  ;;  %v1924_v57 = vpack.c.bf16 %v649_v54, %v647_v53  ;;  %v646_v58 = vld [vmem:[%s2749_s4 + $0xa0] sm:$0xff]  ;;  %v648_v59 = vld [vmem:[%s2749_s4 + $0xb0] sm:$0xff]  ;;  %v651_v60 = vld [vmem:[%s2749_s4 + $0xc8] sm:$0xff] }
  0x13   : > { %1915 = vmatpush1.bf16.msra.mxu1 %v1914_v37  ;;  %v653_v61 = vld [vmem:[%s2749_s4 + $0xd8] sm:$0xff]  ;;  %v1926_v62 = vpack.c.bf16 %v648_v59, %v646_v58  ;;  %v650_v0 = vld [vmem:[%s2749_s4 + $0xc0] sm:$0xff]  ;;  %v652_v1 = vld [vmem:[%s2749_s4 + $0xd0] sm:$0xff] }
  0x14   : > { %1917 = vmatprep.subr.bf16.mxu1 %v1916_v40  ;;  %v1928_v63 = vpack.c.bf16 %v653_v61, %v651_v60  ;;  %v427_v2 = vld [vmem:[%s2170_s26 + $0x8] sm:$0xff]  ;;  %v1930_v3 = vpack.c.bf16 %v652_v1, %v650_v0  ;;  %v428_v4 = vld [vmem:[%s2170_s26 + $0x10] sm:$0xff]  ;;  %v429_v5 = vld [vmem:[%s2170_s26 + $0x18] sm:$0xff] }
  0x15   : > { %1887 = vmatpush3.bf16.msra.mxu0 %v1884_v18  ;;  %v430_v6 = vld [vmem:[%s2170_s26 + $0x20] sm:$0xff]  ;;  %v431_v7 = vld [vmem:[%s2170_s26 + $0x28] sm:$0xff]  ;;  %v432_v8 = vld [vmem:[%s2170_s26 + $0x30] sm:$0xff] }
  0x16   : > { %1889 = vmatprep.subr.bf16.mxu0 %v1888_v26  ;;  %v433_v9 = vld [vmem:[%s2170_s26 + $0x38] sm:$0xff]  ;;  %v434_v10 = vld [vmem:[%s2170_s26 + $0x40] sm:$0xff]  ;;  %v435_v11 = vld [vmem:[%s2170_s26 + $0x48] sm:$0xff] }
  0x17   : > { %1919 = vmatpush1.bf16.msra.mxu1 %v1918_v46  ;;  %v436_v12 = vld [vmem:[%s2170_s26 + $0x50] sm:$0xff]  ;;  %v437_v13 = vld [vmem:[%s2170_s26 + $0x58] sm:$0xff]  ;;  %v438_v14 = vld [vmem:[%s2170_s26 + $0x60] sm:$0xff] }
  0x18   : > { %1921 = vmatprep.subr.bf16.mxu1 %v1920_v49  ;;  %v439_v15 = vld [vmem:[%s2170_s26 + $0x68] sm:$0xff]  ;;  %v440_v16 = vld [vmem:[%s2170_s26 + $0x70] sm:$0xff]  ;;  %v441_v17 = vld [vmem:[%s2170_s26 + $0x78] sm:$0xff] }
  0x19   : > { %1891 = vmatpush3.bf16.msra.mxu0 %v1888_v26  ;;  %v655_v18 = vld [vmem:[%s2749_s4 + $0xe8] sm:$0xff]  ;;  %v657_v19 = vld [vmem:[%s2749_s4 + $0xf8] sm:$0xff]  ;;  %v654_v21 = vld [vmem:[%s2749_s4 + $0xe0] sm:$0xff] }
  0x1a   : > { %1893 = vmatprep.subr.bf16.mxu0 %v1892_v38  ;;  %v1932_v20 = vpack.c.bf16 %v657_v19, %v655_v18  ;;  %v656_v22 = vld [vmem:[%s2749_s4 + $0xf0] sm:$0xff]  ;;  %v959_v25 = vld [vmem:[%s2751_s6] sm:$0xff]  ;;  %v960_v26 = vld [vmem:[%s2751_s6 + $0x8] sm:$0xff] }
  0x1b   : > { %1923 = vmatpush1.bf16.msra.mxu1 %v1922_v55  ;;  %v1934_v23 = vpack.c.bf16 %v656_v22, %v654_v21  ;;  %v1936_v27 = vpack.c.bf16 %v960_v26, %v959_v25  ;;  %v2312_v28 = vld [vmem:[%s2748_s3] ss:$0 sm:$0xff]  ;;  %v965_v19 = vld [vmem:[%s2751_s6 + $0x30] sm:$0xff]  ;;  %v970_v26 = vld [vmem:[%s2751_s6 + $0x58] sm:$0xff] }
  0x1c   : > { %1925 = vmatprep.subr.bf16.mxu1 %v1924_v57  ;;  %v967_v22 = vld [vmem:[%s2751_s6 + $0x40] sm:$0xff]  ;;  %v969_v25 = vld [vmem:[%s2751_s6 + $0x50] sm:$0xff] }
  0x1d   : > { %1895 = vmatpush3.bf16.msra.mxu0 %v1892_v38 }
  0x1e   : > { %1897 = vmatprep.subr.bf16.mxu0 %v1896_v47 }
  0x1f   : > { %1927 = vmatpush1.bf16.msra.mxu1 %v1926_v62 }
  0x20   : > { %1929 = vmatprep.subr.bf16.mxu1 %v1928_v63 }
  0x21   : > { %1899 = vmatpush3.bf16.msra.mxu0 %v1896_v47 }
  0x22   : > { %1901 = vmatprep.subr.bf16.mxu0 %v1900_v56 }
  0x23   : > { %1931 = vmatpush1.bf16.msra.mxu1 %v1930_v3 }
  0x24   : > { %1933 = vmatprep.subr.bf16.mxu1 %v1932_v20  ;;  %v966_v20 = vld [vmem:[%s2751_s6 + $0x38] sm:$0xff] }
  0x25   : > { %1903 = vmatpush3.bf16.msra.mxu0 %v1900_v56  ;;  %v1948_v21 = vpack.c.bf16 %v966_v20, %v965_v19 }
  0x26   : > { %1937 = vmatprep.subr.bf16.mxu0 %v1936_v27 }
  0x27   : > { %1935 = vmatpush1.bf16.msra.mxu1 %v1934_v23  ;;  %v968_v23 = vld [vmem:[%s2751_s6 + $0x48] sm:$0xff] }
  0x28   : > { %1737 = vmatmul.mubr.f32.vlgmr.msra.gmra.mrb[0].mxu0 %v427_v2 }
  0x29   : > { %1739 = vmatprep.mubr.f32.mxu0 %v428_v4  ;;  %1939 = vmatpush3.bf16.msra.mxu0 %v1936_v27  ;;  %v1956_v27 = vpack.c.bf16 %v970_v26, %v969_v25 }
  0x2c   : > { %1740 = vmatmul.mubr.f32.gmra.mrb[2].mxu0 %v429_v5 }
  0x2d   : > { %1742 = vmatprep.mubr.f32.mxu0 %v430_v6 }
  0x30   : > { %1743 = vmatmul.mubr.f32.gmra.mrb[4].mxu0 %v431_v7 }
  0x31   : > { %1745 = vmatprep.mubr.f32.mxu0 %v432_v8 }
  0x34   : > { %1746 = vmatmul.mubr.f32.gmra.mrb[6].mxu0 %v433_v9 }
  0x35   : > { %1748 = vmatprep.mubr.f32.mxu0 %v434_v10 }
  0x38   : > { %1749 = vmatmul.mubr.f32.gmra.mrb[8].mxu0 %v435_v11 }
  0x39   : > { %1751 = vmatprep.mubr.f32.mxu0 %v436_v12 }
  0x3c   : > { %1752 = vmatmul.mubr.f32.gmra.mrb[10].mxu0 %v437_v13  ;;  %v961_v13 = vld [vmem:[%s2751_s6 + $0x10] sm:$0xff] }
  0x3d   : > { %1754 = vmatprep.mubr.f32.mxu0 %v438_v14  ;;  %v962_v14 = vld [vmem:[%s2751_s6 + $0x18] sm:$0xff] }
  0x40   : > { %1755 = vmatmul.mubr.f32.gmra.mrb[12].mxu0 %v439_v15  ;;  %v1940_v15 = vpack.c.bf16 %v962_v14, %v961_v13 }
  0x41   : > { %1757 = vmatprep.mubr.f32.mxu0 %v440_v16  ;;  %v963_v16 = vld [vmem:[%s2751_s6 + $0x20] sm:$0xff] }
  0x42   : > { %1941 = vmatprep.subr.bf16.mxu0 %v1940_v15 }
  0x43   : > { %1943 = vmatpush3.bf16.msra.mxu0 %v1940_v15 }
  0x44   : > { %1758 = vmatmul.mubr.f32.gmra.mrb[14].mxu0 %v441_v17  ;;  %v964_v17 = vld [vmem:[%s2751_s6 + $0x28] sm:$0xff] }
  0x45   : > { %v1944_v18 = vpack.c.bf16 %v964_v17, %v963_v16 }
  0x47   : > { %1945 = vmatprep.subr.bf16.mxu0 %v1944_v18 }
  0x48   : > { %1947 = vmatpush3.bf16.msra.mxu0 %v1944_v18 }
  0x49   : > { %1949 = vmatprep.subr.bf16.mxu0 %v1948_v21 }
  0x4c   : > { %1951 = vmatpush3.bf16.msra.mxu0 %v1948_v21 }
  0xfb   : > { %v1738_v29 = vpop.f32.mrb[0].mxu0 }
  0xfc   : > { %v531_v30 = vpop.f32.mrb[1].mxu0  ;;  %v537_v32 = vadd.f32 %v1738_v29, %v2312_v28  ;;  %v972_v29 = vld [vmem:[%s2751_s6 + $0x68] sm:$0xff] }
  0xfd   : > { %v532_v31 = vadd.f32 %v2312_v28, %v531_v30 }
  0xfe   : > { %v611_v37 = vmax.f32 %v537_v32, 0.0  ;;  %v974_v32 = vld [vmem:[%s2751_s6 + $0x78] sm:$0xff] }
  0xff   : > { %v610_v33 = vmax.f32 %v532_v31, 0.0  ;;  %v1741_v34 = vpop.f32.mrb[2].mxu0  ;;  %v973_v31 = vld [vmem:[%s2751_s6 + $0x70] sm:$0xff] }
 0x100   : > { %v541_v35 = vpop.f32.mrb[3].mxu0  ;;  %v547_v41 = vadd.f32 %v1741_v34, %v2312_v28  ;;  %v660_v34 = vlaneseq }
 0x101   : > { %735 = vmatmul.mubr.f32.vlgmr.msra.gmra.mrb[0].mxu1 %v610_v33  ;;  %v542_v36 = vadd.f32 %v2312_v28, %v541_v35  ;;  %v1964_v33 = vpack.c.bf16 %v974_v32, %v973_v31 }
 0x102   : > { %740 = vmatprep.mubr.f32.mxu1 %v2065_v24  ;;  %v613_v45 = vmax.f32 %v547_v41, 0.0  ;;  %v661_v35 = vshrl.u32 %v660_v34, 7 }
 0x103   : > { %v1744_v38 = vpop.f32.mrb[4].mxu0  ;;  %v612_v40 = vmax.f32 %v542_v36, 0.0 }
 0x104   : > { %v551_v39 = vpop.f32.mrb[5].mxu0  ;;  %v557_v49 = vadd.f32 %v1744_v38, %v2312_v28  ;;  %v662_v36 = vsub.s32 0, %v661_v35  ;;  %v666_v38 = vsub.s32 1, %v661_v35 }
 0x105   : > { %741 = vmatmul.mubr.f32.gmra.mrb[2].mxu1 %v611_v37  ;;  %v552_v44 = vadd.f32 %v2312_v28, %v551_v39  ;;  %v658_v37 = vld [vmem:[%s2750_s5] sm:$0x3] }
 0x106   : > { %746 = vmatprep.mubr.f32.mxu1 %v2065_v24  ;;  %v615_v53 = vmax.f32 %v557_v49, 0.0  ;;  %v2390_v39 = vrot.slane %v658_v37, %v662_v36 }
 0x107   : > { %v1747_v42 = vpop.f32.mrb[6].mxu0  ;;  %v614_v48 = vmax.f32 %v552_v44, 0.0 }
 0x108   : > { %v561_v43 = vpop.f32.mrb[7].mxu0  ;;  %v567_v57 = vadd.f32 %v1747_v42, %v2312_v28 }
 0x109   : > { %747 = vmatmul.mubr.f32.gmra.mrb[4].mxu1 %v612_v40  ;;  %v562_v52 = vadd.f32 %v2312_v28, %v561_v43  ;;  %v2392_v40 = vrot.slane %v658_v37, %v666_v38 }
 0x10a   : > { %752 = vmatprep.mubr.f32.mxu1 %v2065_v24  ;;  %v617_v61 = vmax.f32 %v567_v57, 0.0 }
 0x10b   : > { %v1750_v46 = vpop.f32.mrb[8].mxu0  ;;  %v616_v56 = vmax.f32 %v562_v52, 0.0 }
 0x10c   : > { %v571_v47 = vpop.f32.mrb[9].mxu0  ;;  %v577_v63 = vadd.f32 %v1750_v46, %v2312_v28 }
 0x10d   : > { %753 = vmatmul.mubr.f32.gmra.mrb[6].mxu1 %v613_v45  ;;  %v572_v60 = vadd.f32 %v2312_v28, %v571_v47 }
 0x10e   : > { %758 = vmatprep.mubr.f32.mxu1 %v2065_v24  ;;  %v619_v1 = vmax.f32 %v577_v63, 0.0 }
 0x10f   : > { %v1753_v50 = vpop.f32.mrb[10].mxu0  ;;  %v618_v62 = vmax.f32 %v572_v60, 0.0 }
 0x110   : > { %v581_v51 = vpop.f32.mrb[11].mxu0  ;;  %v587_v3 = vadd.f32 %v1753_v50, %v2312_v28 }
 0x111   : > { %759 = vmatmul.mubr.f32.gmra.mrb[8].mxu1 %v614_v48  ;;  %v582_v0 = vadd.f32 %v2312_v28, %v581_v51 }
 0x112   : > { %764 = vmatprep.mubr.f32.mxu1 %v2065_v24  ;;  %v621_v5 = vmax.f32 %v587_v3, 0.0 }
 0x113   : > { %v1756_v54 = vpop.f32.mrb[12].mxu0  ;;  %v620_v2 = vmax.f32 %v582_v0, 0.0 }
 0x114   : > { %v591_v55 = vpop.f32.mrb[13].mxu0  ;;  %v597_v7 = vadd.f32 %v1756_v54, %v2312_v28 }
 0x115   : > { %765 = vmatmul.mubr.f32.gmra.mrb[10].mxu1 %v615_v53  ;;  %v592_v4 = vadd.f32 %v2312_v28, %v591_v55 }
 0x116   : > { %770 = vmatprep.mubr.f32.mxu1 %v2065_v24  ;;  %v623_v9 = vmax.f32 %v597_v7, 0.0 }
 0x117   : > { %v1759_v58 = vpop.f32.mrb[14].mxu0  ;;  %v622_v6 = vmax.f32 %v592_v4, 0.0 }
 0x118   : > { %v601_v59 = vpop.f32.mrb[15].mxu0  ;;  %v607_v11 = vadd.f32 %v1759_v58, %v2312_v28 }
 0x119   : > { %771 = vmatmul.mubr.f32.gmra.mrb[12].mxu1 %v616_v56  ;;  %v602_v8 = vadd.f32 %v2312_v28, %v601_v59  ;;  %v971_v28 = vld [vmem:[%s2751_s6 + $0x60] sm:$0xff] }
 0x11a   : > { %776 = vmatprep.mubr.f32.mxu1 %v2065_v24  ;;  %v625_v12 = vmax.f32 %v607_v11, 0.0  ;;  %v1960_v30 = vpack.c.bf16 %v972_v29, %v971_v28 }
 0x11b   : > { %v624_v10 = vmax.f32 %v602_v8, 0.0 }
 0x11d   : > { %777 = vmatmul.mubr.f32.gmra.mrb[14].mxu1 %v617_v61 }
 0x11e   : > { %782 = vmatprep.mubr.f32.mxu1 %v2065_v24 }
 0x121   : > { %783 = vmatmul.mubr.f32.gmra.mrb[16].mxu1 %v618_v62 }
 0x122   : > { %788 = vmatprep.mubr.f32.mxu1 %v2065_v24 }
 0x125   : > { %789 = vmatmul.mubr.f32.gmra.mrb[18].mxu1 %v619_v1 }
 0x126   : > { %794 = vmatprep.mubr.f32.mxu1 %v2065_v24 }
 0x129   : > { %795 = vmatmul.mubr.f32.gmra.mrb[20].mxu1 %v620_v2 }
 0x12a   : > { %800 = vmatprep.mubr.f32.mxu1 %v2065_v24 }
 0x12d   : > { %801 = vmatmul.mubr.f32.gmra.mrb[22].mxu1 %v621_v5 }
 0x12e   : > { %806 = vmatprep.mubr.f32.mxu1 %v2065_v24 }
 0x131   : > { %807 = vmatmul.mubr.f32.gmra.mrb[24].mxu1 %v622_v6 }
 0x132   : > { %812 = vmatprep.mubr.f32.mxu1 %v2065_v24 }
 0x135   : > { %813 = vmatmul.mubr.f32.gmra.mrb[26].mxu1 %v623_v9 }
 0x136   : > { %818 = vmatprep.mubr.f32.mxu1 %v2065_v24 }
 0x139   : > { %819 = vmatmul.mubr.f32.gmra.mrb[28].mxu1 %v624_v10 }
 0x13a   : > { %824 = vmatprep.mubr.f32.mxu1 %v2065_v24  ;;  %v1952_v24 = vpack.c.bf16 %v968_v23, %v967_v22  ;;  %v911_v23 = vld [vmem:[%s2430_s24] sm:$0xff] }
 0x13c   : > { %1953 = vmatprep.subr.bf16.mxu0 %v1952_v24 }
 0x13d   : > { %825 = vmatmul.mubr.f32.gmra.mrb[30].mxu1 %v625_v12  ;;  %1955 = vmatpush3.bf16.msra.mxu0 %v1952_v24 }
 0x13e   : > { %1957 = vmatprep.subr.bf16.mxu0 %v1956_v27 }
 0x141   : > { %1959 = vmatpush3.bf16.msra.mxu0 %v1956_v27 }
 0x142   : > { %1961 = vmatprep.subr.bf16.mxu0 %v1960_v30 }
 0x145   : > { %1963 = vmatpush3.bf16.msra.mxu0 %v1960_v30 }
 0x146   : > { %1965 = vmatprep.subr.bf16.mxu0 %v1964_v33 }
 0x149   : > { %1967 = vmatpush3.bf16.msra.mxu0 %v1964_v33 }
 0x1d4   : > { %v736_v41 = vpop.f32.mrb[0].mxu1 }
 0x1d5   : > { %v737_v42 = vadd.f32 %v736_v41, %v2390_v39  ;;  %v738_v43 = vpop.f32.mrb[1].mxu1 }
 0x1d6   : > { %v739_v44 = vadd.f32 %v738_v43, %v2392_v40 }
 0x1d7   : > { %v2396_v45 = vmax.f32 %v737_v42, 0.0 }
 0x1d8   : > { %v832_v46 = vmax.f32 %v739_v44, 0.0  ;;  %v742_v47 = vpop.f32.mrb[2].mxu1 }
 0x1d9   : > { %v1359_v48 = vmul.f32 %v2396_v45, %v2396_v45  ;;  %v743_v49 = vadd.f32 %v742_v47, %v2390_v39  ;;  %v744_v50 = vpop.f32.mrb[3].mxu1 }
 0x1da   : > { %v863_v51 = vmul.f32 0.5, %v832_v46  ;;  %v1343_v52 = vadd.f32 1.0, %v832_v46  ;;  %v745_v53 = vadd.f32 %v744_v50, %v2392_v40 }
 0x1db   : > { %v2402_v54 = vmax.f32 %v743_v49, 0.0 }
 0x1dc   : > { %v879_v55 = vmul.f32 1.442695, %v863_v51  ;;  %v834_v56 = vmax.f32 %v745_v53, 0.0  ;;  %v748_v57 = vpop.f32.mrb[4].mxu1  ;;  %v1375_v58 = vsub.f32 %v1343_v52, %v1359_v48  ;;  %v912_v48 = vld [vmem:[%s2430_s24 + $0x8] sm:$0xff] }
 0x1dd   : > { %v2406_v59 = vmul.f32 %v2402_v54, %v2402_v54  ;;  %v749_v60 = vadd.f32 %v748_v57, %v2390_v39  ;;  %v750_v61 = vpop.f32.mrb[5].mxu1 }
 0x1de   : > { %2025 = vpow2.f32 %v879_v55  ;;  %v864_v62 = vmul.f32 0.5, %v834_v56  ;;  %v2409_v63 = vadd.f32 1.0, %v834_v56  ;;  %v751_v0 = vadd.f32 %v750_v61, %v2392_v40 }
 0x1df   : > { %v2412_v1 = vmax.f32 %v749_v60, 0.0 }
 0x1e0   : > { %v881_v2 = vmul.f32 1.442695, %v864_v62  ;;  %v836_v3 = vmax.f32 %v751_v0, 0.0  ;;  %v754_v4 = vpop.f32.mrb[6].mxu1  ;;  %v1376_v5 = vsub.f32 %v2409_v63, %v2406_v59  ;;  %v913_v0 = vld [vmem:[%s2430_s24 + $0x10] sm:$0xff] }
 0x1e1   : > { %v2418_v6 = vmul.f32 %v2412_v1, %v2412_v1  ;;  %v755_v7 = vadd.f32 %v754_v4, %v2390_v39  ;;  %v756_v8 = vpop.f32.mrb[7].mxu1 }
 0x1e2   : > { %2027 = vpow2.f32 %v881_v2  ;;  %v865_v9 = vmul.f32 0.5, %v836_v3  ;;  %v2421_v10 = vadd.f32 1.0, %v836_v3  ;;  %v757_v11 = vadd.f32 %v756_v8, %v2392_v40 }
 0x1e3   : > { %v2424_v12 = vmax.f32 %v755_v7, 0.0 }
 0x1e4   : > { %v883_v13 = vmul.f32 1.442695, %v865_v9  ;;  %v838_v14 = vmax.f32 %v757_v11, 0.0  ;;  %v760_v15 = vpop.f32.mrb[8].mxu1  ;;  %v1377_v16 = vsub.f32 %v2421_v10, %v2418_v6 }
 0x1e5   : > { %v2436_v17 = vmul.f32 %v2424_v12, %v2424_v12  ;;  %v761_v18 = vadd.f32 %v760_v15, %v2390_v39  ;;  %v762_v19 = vpop.f32.mrb[9].mxu1 }
 0x1e6   : > { %2029 = vpow2.f32 %v883_v13  ;;  %v866_v20 = vmul.f32 0.5, %v838_v14  ;;  %v2439_v21 = vadd.f32 1.0, %v838_v14  ;;  %v763_v22 = vadd.f32 %v762_v19, %v2392_v40 }
 0x1e7   : > { %v2443_v24 = vmax.f32 %v761_v18, 0.0 }
 0x1e8   : > { %v2026_v25 = vpop.eup %2025  ;;  %v885_v26 = vmul.f32 1.442695, %v866_v20  ;;  %v840_v27 = vmax.f32 %v763_v22, 0.0  ;;  %v766_v28 = vpop.f32.mrb[10].mxu1  ;;  %v1378_v29 = vsub.f32 %v2439_v21, %v2436_v17 }
 0x1e9   : > { %v2449_v30 = vmul.f32 %v2443_v24, %v2443_v24  ;;  %v767_v31 = vadd.f32 %v766_v28, %v2390_v39  ;;  %v768_v32 = vpop.f32.mrb[11].mxu1  ;;  %v1391_v33 = vmul.f32 %v2026_v25, %v2026_v25  ;;  %v927_v34 = vmul.f32 %v2026_v25, %v911_v23 }
 0x1ea   : > { %2031 = vpow2.f32 %v885_v26  ;;  %v867_v35 = vmul.f32 0.5, %v840_v27  ;;  %v2452_v36 = vadd.f32 1.0, %v840_v27  ;;  %v769_v37 = vadd.f32 %v768_v32, %v2392_v40 }
 0x1eb   : > { %v2455_v38 = vmax.f32 %v767_v31, 0.0  ;;  %v1407_v41 = vsub.f32 %v1375_v58, %v1391_v33  ;;  %v943_v42 = vadd.f32 %v927_v34, %v2396_v45 }
 0x1ec   : > { %v2028_v43 = vpop.eup %2027  ;;  %v887_v44 = vmul.f32 1.442695, %v867_v35  ;;  %v842_v46 = vmax.f32 %v769_v37, 0.0  ;;  %v772_v47 = vpop.f32.mrb[12].mxu1  ;;  %v1379_v49 = vsub.f32 %v2452_v36, %v2449_v30 }
 0x1ed   : > { %v2463_v50 = vmul.f32 %v2455_v38, %v2455_v38  ;;  %v773_v51 = vadd.f32 %v772_v47, %v2390_v39  ;;  %v774_v52 = vpop.f32.mrb[13].mxu1  ;;  %1423 = vadd.xlane.f32.xlu0 %v1407_v41  ;;  %1792 = vmatprep.mubr.f32.mxu0 %v943_v42  ;;  %v1392_v53 = vmul.f32 %v2028_v43, %v2028_v43 }
 0x1ee   : > { %2033 = vpow2.f32 %v887_v44  ;;  %v868_v45 = vmul.f32 0.5, %v842_v46  ;;  %v2466_v55 = vadd.f32 1.0, %v842_v46  ;;  %v775_v56 = vadd.f32 %v774_v52, %v2392_v40 }
 0x1ef   : > { %v2469_v57 = vmax.f32 %v773_v51, 0.0  ;;  %v1408_v58 = vsub.f32 %v1376_v5, %v1392_v53  ;;  %v928_v59 = vmul.f32 %v2028_v43, %v912_v48 }
 0x1f0   : > { %v2030_v60 = vpop.eup %2029  ;;  %v889_v61 = vmul.f32 1.442695, %v868_v45  ;;  %v844_v62 = vmax.f32 %v775_v56, 0.0  ;;  %v778_v63 = vpop.f32.mrb[14].mxu1  ;;  %v1380_v2 = vsub.f32 %v2466_v55, %v2463_v50 }
 0x1f1   : > { %v2476_v3 = vmul.f32 %v2469_v57, %v2469_v57  ;;  %v779_v4 = vadd.f32 %v778_v63, %v2390_v39  ;;  %v780_v7 = vpop.f32.mrb[15].mxu1  ;;  %1425 = vadd.xlane.f32.xlu0 %v1408_v58  ;;  %v944_v5 = vadd.f32 %v928_v59, %v2402_v54  ;;  %v1393_v8 = vmul.f32 %v2030_v60, %v2030_v60  ;;  %v914_v54 = vld [vmem:[%s2430_s24 + $0x18] sm:$0xff] }
 0x1f2   : > { %2035 = vpow2.f32 %v889_v61  ;;  %v869_v9 = vmul.f32 0.5, %v844_v62  ;;  %v2480_v11 = vadd.f32 1.0, %v844_v62  ;;  %v781_v13 = vadd.f32 %v780_v7, %v2392_v40 }
 0x1f3   : > { %v2483_v14 = vmax.f32 %v779_v4, 0.0  ;;  %1793 = vmatmul.mubr.f32.vlgmr.msra.gmra.mrb[16].mxu0 %v944_v5  ;;  %v1409_v15 = vsub.f32 %v1377_v16, %v1393_v8  ;;  %v929_v18 = vmul.f32 %v2030_v60, %v913_v0 }
 0x1f4   : > { %v2032_v19 = vpop.eup %2031  ;;  %v891_v20 = vmul.f32 1.442695, %v869_v9  ;;  %v846_v22 = vmax.f32 %v781_v13, 0.0  ;;  %v784_v23 = vpop.f32.mrb[16].mxu1  ;;  %v1381_v25 = vsub.f32 %v2480_v11, %v2476_v3 }
 0x1f5   : > { %v2493_v26 = vmul.f32 %v2483_v14, %v2483_v14  ;;  %v785_v27 = vadd.f32 %v784_v23, %v2390_v39  ;;  %v786_v28 = vpop.f32.mrb[17].mxu1  ;;  %1427 = vadd.xlane.f32.xlu1 %v1409_v15  ;;  %v945_v6 = vadd.f32 %v929_v18, %v2412_v1  ;;  %v1394_v10 = vmul.f32 %v2032_v19, %v2032_v19  ;;  %v915_v1 = vld [vmem:[%s2430_s24 + $0x20] sm:$0xff] }
 0x1f6   : > { %2037 = vpow2.f32 %v891_v20  ;;  %v870_v16 = vmul.f32 0.5, %v846_v22  ;;  %v2497_v31 = vadd.f32 1.0, %v846_v22  ;;  %v787_v32 = vadd.f32 %v786_v28, %v2392_v40 }
 0x1f7   : > { %v2500_v33 = vmax.f32 %v785_v27, 0.0  ;;  %1795 = vmatprep.mubr.f32.mxu0 %v945_v6  ;;  %v1410_v34 = vsub.f32 %v1378_v29, %v1394_v10  ;;  %v930_v35 = vmul.f32 %v2032_v19, %v914_v54 }
 0x1f8   : > { %v2034_v37 = vpop.eup %2033  ;;  %v893_v41 = vmul.f32 1.442695, %v870_v16  ;;  %v848_v42 = vmax.f32 %v787_v32, 0.0  ;;  %v790_v43 = vpop.f32.mrb[18].mxu1  ;;  %v1382_v44 = vsub.f32 %v2497_v31, %v2493_v26 }
 0x1f9   : > { %v2510_v46 = vmul.f32 %v2500_v33, %v2500_v33  ;;  %v791_v47 = vadd.f32 %v790_v43, %v2390_v39  ;;  %v792_v48 = vpop.f32.mrb[19].mxu1  ;;  %1429 = vadd.xlane.f32.xlu1 %v1410_v34  ;;  %v946_v17 = vadd.f32 %v930_v35, %v2424_v12  ;;  %v1395_v21 = vmul.f32 %v2034_v37, %v2034_v37  ;;  %v916_v12 = vld [vmem:[%s2430_s24 + $0x28] sm:$0xff] }
 0x1fa   : > { %2039 = vpow2.f32 %v893_v41  ;;  %v871_v29 = vmul.f32 0.5, %v848_v42  ;;  %v2514_v51 = vadd.f32 1.0, %v848_v42  ;;  %v793_v52 = vadd.f32 %v792_v48, %v2392_v40 }
 0x1fb   : > { %v2517_v53 = vmax.f32 %v791_v47, 0.0  ;;  %1796 = vmatmul.mubr.f32.gmra.mrb[18].mxu0 %v946_v17  ;;  %v1411_v45 = vsub.f32 %v1379_v49, %v1395_v21  ;;  %v931_v56 = vmul.f32 %v2034_v37, %v915_v1 }
 0x1fc   : > { %v2036_v58 = vpop.eup %2035  ;;  %v895_v59 = vmul.f32 1.442695, %v871_v29  ;;  %v850_v60 = vmax.f32 %v793_v52, 0.0  ;;  %v796_v61 = vpop.f32.mrb[20].mxu1  ;;  %v1383_v62 = vsub.f32 %v2514_v51, %v2510_v46 }
 0x1fd   : > { %v2527_v63 = vmul.f32 %v2517_v53, %v2517_v53  ;;  %v797_v0 = vadd.f32 %v796_v61, %v2390_v39  ;;  %v798_v4 = vpop.f32.mrb[21].mxu1  ;;  %1431 = vadd.xlane.f32.xlu0 %v1411_v45  ;;  %v947_v30 = vadd.f32 %v931_v56, %v2443_v24  ;;  %v1396_v36 = vmul.f32 %v2036_v58, %v2036_v58  ;;  %v917_v24 = vld [vmem:[%s2430_s24 + $0x30] sm:$0xff] }
 0x1fe   : > { %2041 = vpow2.f32 %v895_v59  ;;  %v872_v49 = vmul.f32 0.5, %v850_v60  ;;  %v2531_v7 = vadd.f32 1.0, %v850_v60  ;;  %v799_v5 = vadd.f32 %v798_v4, %v2392_v40 }
 0x1ff   : > { %v2534_v8 = vmax.f32 %v797_v0, 0.0  ;;  %1798 = vmatprep.mubr.f32.mxu0 %v947_v30  ;;  %v1412_v9 = vsub.f32 %v1380_v2, %v1396_v36  ;;  %v932_v13 = vmul.f32 %v2036_v58, %v916_v12 }
 0x200   : > { %v2038_v15 = vpop.eup %2037  ;;  %v897_v18 = vmul.f32 1.442695, %v872_v49  ;;  %v852_v19 = vmax.f32 %v799_v5, 0.0  ;;  %v802_v20 = vpop.f32.mrb[22].mxu1  ;;  %v1384_v22 = vsub.f32 %v2531_v7, %v2527_v63 }
 0x201   : > { %v2544_v23 = vmul.f32 %v2534_v8, %v2534_v8  ;;  %v803_v54 = vadd.f32 %v802_v20, %v2390_v39  ;;  %v804_v27 = vpop.f32.mrb[23].mxu1  ;;  %1433 = vadd.xlane.f32.xlu1 %v1412_v9  ;;  %v948_v50 = vadd.f32 %v932_v13, %v2455_v38  ;;  %v1397_v55 = vmul.f32 %v2038_v15, %v2038_v15  ;;  %v918_v38 = vld [vmem:[%s2430_s24 + $0x38] sm:$0xff] }
 0x202   : > { %2043 = vpow2.f32 %v897_v18  ;;  %v873_v2 = vmul.f32 0.5, %v852_v19  ;;  %v2548_v28 = vadd.f32 1.0, %v852_v19  ;;  %v805_v6 = vadd.f32 %v804_v27, %v2392_v40 }
 0x203   : > { %v2551_v10 = vmax.f32 %v803_v54, 0.0  ;;  %1799 = vmatmul.mubr.f32.gmra.mrb[20].mxu0 %v948_v50  ;;  %v1413_v16 = vsub.f32 %v1381_v25, %v1397_v55  ;;  %v933_v32 = vmul.f32 %v2038_v15, %v917_v24 }
 0x204   : > { %v2040_v34 = vpop.eup %2039  ;;  %v899_v35 = vmul.f32 1.442695, %v873_v2  ;;  %v854_v37 = vmax.f32 %v805_v6, 0.0  ;;  %v808_v41 = vpop.f32.mrb[24].mxu1  ;;  %v1385_v42 = vsub.f32 %v2548_v28, %v2544_v23 }
 0x205   : > { %v2561_v43 = vmul.f32 %v2551_v10, %v2551_v10  ;;  %v809_v1 = vadd.f32 %v808_v41, %v2390_v39  ;;  %v810_v47 = vpop.f32.mrb[25].mxu1  ;;  %1435 = vadd.xlane.f32.xlu0 %v1413_v16  ;;  %v949_v3 = vadd.f32 %v933_v32, %v2469_v57  ;;  %v1398_v11 = vmul.f32 %v2040_v34, %v2040_v34  ;;  %v919_v57 = vld [vmem:[%s2430_s24 + $0x40] sm:$0xff] }
 0x206   : > { %2045 = vpow2.f32 %v899_v35  ;;  %v874_v25 = vmul.f32 0.5, %v854_v37  ;;  %v2565_v48 = vadd.f32 1.0, %v854_v37  ;;  %v811_v17 = vadd.f32 %v810_v47, %v2392_v40 }
 0x207   : > { %v2568_v21 = vmax.f32 %v809_v1, 0.0  ;;  %1801 = vmatprep.mubr.f32.mxu0 %v949_v3  ;;  %v1414_v29 = vsub.f32 %v1382_v44, %v1398_v11  ;;  %v934_v52 = vmul.f32 %v2040_v34, %v918_v38  ;;  %v922_v11 = vld [vmem:[%s2430_s24 + $0x58] sm:$0xff] }
 0x208   : > { %v2042_v45 = vpop.eup %2041  ;;  %v901_v56 = vmul.f32 1.442695, %v874_v25  ;;  %v856_v58 = vmax.f32 %v811_v17, 0.0  ;;  %v814_v59 = vpop.f32.mrb[26].mxu1  ;;  %v1386_v60 = vsub.f32 %v2565_v48, %v2561_v43 }
 0x209   : > { %v2578_v61 = vmul.f32 %v2568_v21, %v2568_v21  ;;  %v815_v12 = vadd.f32 %v814_v59, %v2390_v39  ;;  %v816_v0 = vpop.f32.mrb[27].mxu1  ;;  %1437 = vadd.xlane.f32.xlu1 %v1414_v29  ;;  %v950_v26 = vadd.f32 %v934_v52, %v2483_v14  ;;  %v1399_v31 = vmul.f32 %v2042_v45, %v2042_v45  ;;  %v920_v14 = vld [vmem:[%s2430_s24 + $0x48] sm:$0xff] }
 0x20a   : > { %2047 = vpow2.f32 %v901_v56  ;;  %v875_v44 = vmul.f32 0.5, %v856_v58  ;;  %v2582_v4 = vadd.f32 1.0, %v856_v58  ;;  %v817_v30 = vadd.f32 %v816_v0, %v2392_v40 }
 0x20b   : > { %v2585_v36 = vmax.f32 %v815_v12, 0.0  ;;  %1802 = vmatmul.mubr.f32.gmra.mrb[22].mxu0 %v950_v26  ;;  %v1415_v49 = vsub.f32 %v1383_v62, %v1399_v31  ;;  %v935_v5 = vmul.f32 %v2042_v45, %v919_v57  ;;  %v923_v12 = vld [vmem:[%s2430_s24 + $0x60] sm:$0xff] }
 0x20c   : > { %v2044_v9 = vpop.eup %2043  ;;  %v903_v13 = vmul.f32 1.442695, %v875_v44  ;;  %v858_v15 = vmax.f32 %v817_v30, 0.0  ;;  %v820_v18 = vpop.f32.mrb[28].mxu1  ;;  %v1387_v19 = vsub.f32 %v2582_v4, %v2578_v61  ;;  %v924_v44 = vld [vmem:[%s2430_s24 + $0x68] sm:$0xff] }
 0x20d   : > { %v2595_v20 = vmul.f32 %v2585_v36, %v2585_v36  ;;  %v821_v24 = vadd.f32 %v820_v18, %v2390_v39  ;;  %v822_v54 = vpop.f32.mrb[29].mxu1  ;;  %1439 = vadd.xlane.f32.xlu0 %v1415_v49  ;;  %v951_v46 = vadd.f32 %v935_v5, %v2500_v33  ;;  %v1400_v51 = vmul.f32 %v2044_v9, %v2044_v9  ;;  %v921_v33 = vld [vmem:[%s2430_s24 + $0x50] sm:$0xff]  ;;  %v926_v18 = vld [vmem:[%s2430_s24 + $0x78] sm:$0xff] }
 0x20e   : > { %2049 = vpow2.f32 %v903_v13  ;;  %v876_v62 = vmul.f32 0.5, %v858_v15  ;;  %v1356_v27 = vadd.f32 1.0, %v858_v15  ;;  %v823_v50 = vadd.f32 %v822_v54, %v2392_v40 }
 0x20f   : > { %v2600_v55 = vmax.f32 %v821_v24, 0.0  ;;  %1804 = vmatprep.mubr.f32.mxu0 %v951_v46  ;;  %v1416_v2 = vsub.f32 %v1384_v22, %v1400_v51  ;;  %v936_v6 = vmul.f32 %v2044_v9, %v920_v14  ;;  %v1144_v51 = vld [vmem:[%s2753_s8 + $0x8] sm:$0xff] }
 0x210   : > { %v2046_v16 = vpop.eup %2045  ;;  %v905_v32 = vmul.f32 1.442695, %v876_v62  ;;  %v860_v34 = vmax.f32 %v823_v50, 0.0  ;;  %v826_v35 = vpop.f32.mrb[30].mxu1  ;;  %v1388_v37 = vsub.f32 %v1356_v27, %v2595_v20  ;;  %v1145_v27 = vld [vmem:[%s2753_s8 + $0x10] sm:$0xff]  ;;  %v1146_v50 = vld [vmem:[%s2753_s8 + $0x18] sm:$0xff] }
 0x211   : > { %v1373_v41 = vmul.f32 %v2600_v55, %v2600_v55  ;;  %v827_v38 = vadd.f32 %v826_v35, %v2390_v39  ;;  %v828_v1 = vpop.f32.mrb[31].mxu1  ;;  %1441 = vadd.xlane.f32.xlu1 %v1416_v2  ;;  %v952_v47 = vadd.f32 %v936_v6, %v2517_v53  ;;  %v1401_v63 = vmul.f32 %v2046_v16, %v2046_v16  ;;  %v1147_v2 = vld [vmem:[%s2753_s8 + $0x20] sm:$0xff]  ;;  %v1148_v6 = vld [vmem:[%s2753_s8 + $0x28] sm:$0xff] }
 0x212   : > { %2051 = vpow2.f32 %v905_v32  ;;  %v877_v7 = vmul.f32 0.5, %v860_v34  ;;  %v1357_v22 = vadd.f32 1.0, %v860_v34  ;;  %v829_v3 = vadd.f32 %v828_v1, %v2392_v40  ;;  %v1149_v32 = vld [vmem:[%s2753_s8 + $0x30] sm:$0xff]  ;;  %v1150_v34 = vld [vmem:[%s2753_s8 + $0x38] sm:$0xff] }
 0x213   : > { %v861_v25 = vmax.f32 %v827_v38, 0.0  ;;  %1805 = vmatmul.mubr.f32.gmra.mrb[24].mxu0 %v952_v47  ;;  %v1417_v17 = vsub.f32 %v1385_v42, %v1401_v63  ;;  %v937_v29 = vmul.f32 %v2046_v16, %v921_v33  ;;  %v1976_v16 = vpack.c.bf16 %v1148_v6, %v1147_v2  ;;  %v1151_v33 = vld [vmem:[%s2753_s8 + $0x40] sm:$0xff]  ;;  %v1154_v1 = vld [vmem:[%s2753_s8 + $0x58] sm:$0xff] }
 0x214   : > { %v2048_v39 = vpop.eup %2047  ;;  %v907_v52 = vmul.f32 1.442695, %v877_v7  ;;  %v862_v45 = vmax.f32 %v829_v3, 0.0  ;;  %v1389_v56 = vsub.f32 %v1357_v22, %v1373_v41  ;;  %v1980_v35 = vpack.c.bf16 %v1150_v34, %v1149_v32  ;;  %v1153_v41 = vld [vmem:[%s2753_s8 + $0x50] sm:$0xff]  ;;  %v1155_v63 = vld [vmem:[%s2753_s8 + $0x60] sm:$0xff]  ;;  %v1156_v7 = vld [vmem:[%s2753_s8 + $0x68] sm:$0xff] }
 0x215   : > { %v1374_v53 = vmul.f32 %v861_v25, %v861_v25  ;;  %1443 = vadd.xlane.f32.xlu0 %v1417_v17  ;;  %v953_v58 = vadd.f32 %v937_v29, %v2534_v8  ;;  %v1402_v59 = vmul.f32 %v2048_v39, %v2048_v39  ;;  %v938_v57 = vmul.f32 %v2048_v39, %v922_v11  ;;  %v1157_v3 = vld [vmem:[%s2753_s8 + $0x70] sm:$0xff]  ;;  %v1158_v11 = vld [vmem:[%s2753_s8 + $0x78] sm:$0xff] }
 0x216   : > { %2053 = vpow2.f32 %v907_v52  ;;  %v878_v40 = vmul.f32 0.5, %v862_v45  ;;  %v1358_v61 = vadd.f32 1.0, %v862_v45  ;;  %v1988_v47 = vpack.c.bf16 %v1154_v1, %v1153_v41 }
 0x217   : > { %1807 = vmatprep.mubr.f32.mxu0 %v953_v58  ;;  %v1418_v23 = vsub.f32 %v1386_v60, %v1402_v59  ;;  %v954_v28 = vadd.f32 %v938_v57, %v2551_v10  ;;  %v925_v10 = vld [vmem:[%s2430_s24 + $0x70] sm:$0xff]  ;;  %v1992_v22 = vpack.c.bf16 %v1156_v7, %v1155_v63 }
 0x218   : > { %v2050_v42 = vpop.eup %2049  ;;  %v909_v0 = vmul.f32 1.442695, %v878_v40  ;;  %v1390_v26 = vsub.f32 %v1358_v61, %v1374_v53 }
 0x219   : > { %1445 = vadd.xlane.f32.xlu1 %v1418_v23  ;;  %1808 = vmatmul.mubr.f32.gmra.mrb[26].mxu0 %v954_v28  ;;  %v1403_v8 = vmul.f32 %v2050_v42, %v2050_v42  ;;  %v939_v31 = vmul.f32 %v2050_v42, %v923_v12 }
 0x21a   : > { %2055 = vpow2.f32 %v909_v0 }
 0x21b   : > { %v1419_v4 = vsub.f32 %v1387_v19, %v1403_v8  ;;  %v955_v30 = vadd.f32 %v939_v31, %v2568_v21 }
 0x21c   : > { %v2052_v49 = vpop.eup %2051 }
 0x21d   : > { %1447 = vadd.xlane.f32.xlu0 %v1419_v4  ;;  %1810 = vmatprep.mubr.f32.mxu0 %v955_v30  ;;  %v1404_v43 = vmul.f32 %v2052_v49, %v2052_v49  ;;  %v940_v48 = vmul.f32 %v2052_v49, %v924_v44 }
 0x21f   : > { %v1420_v60 = vsub.f32 %v1388_v37, %v1404_v43  ;;  %v956_v5 = vadd.f32 %v940_v48, %v2585_v36  ;;  %v1143_v36 = vld [vmem:[%s2753_s8] sm:$0xff]  ;;  %v1152_v37 = vld [vmem:[%s2753_s8 + $0x48] sm:$0xff] }
 0x220   : > { %v2054_v9 = vpop.eup %2053  ;;  %v1968_v62 = vpack.c.bf16 %v1144_v51, %v1143_v36  ;;  %v1984_v38 = vpack.c.bf16 %v1152_v37, %v1151_v33 }
 0x221   : > { %1449 = vadd.xlane.f32.xlu1 %v1420_v60  ;;  %1811 = vmatmul.mubr.f32.gmra.mrb[28].mxu0 %v956_v5  ;;  %v1405_v13 = vmul.f32 %v2054_v9, %v2054_v9  ;;  %v941_v15 = vmul.f32 %v2054_v9, %v925_v10 }
 0x222   : > { %1969 = vmatprep.subr.bf16.mxu0 %v1968_v62  ;;  %2000 = vmatprep.subr.bf16.mxu1 %v1968_v62 }
 0x223   : > { %v1421_v14 = vsub.f32 %v1389_v56, %v1405_v13  ;;  %v957_v19 = vadd.f32 %v941_v15, %v2600_v55  ;;  %1971 = vmatpush3.bf16.msra.mxu0 %v1968_v62  ;;  %2008 = vmatpush3.bf16.msra.mxu1 %v1968_v62  ;;  %v1972_v55 = vpack.c.bf16 %v1146_v50, %v1145_v27 }
 0x224   : > { %v2056_v20 = vpop.eup %2055 }
 0x225   : > { %1451 = vadd.xlane.f32.xlu0 %v1421_v14  ;;  %1813 = vmatprep.mubr.f32.mxu0 %v957_v19  ;;  %v1406_v21 = vmul.f32 %v2056_v20, %v2056_v20  ;;  %v942_v24 = vmul.f32 %v2056_v20, %v926_v18  ;;  %v1604_v18 = vld [vmem:[%s2752_s7] ss:$0 sm:$0xff] }
 0x226   : > { %1973 = vmatprep.subr.bf16.mxu0 %v1972_v55  ;;  %2001 = vmatprep.subr.bf16.mxu1 %v1972_v55 }
 0x227   : > { %v1422_v54 = vsub.f32 %v1390_v26, %v1406_v21  ;;  %v958_v46 = vadd.f32 %v942_v24, %v861_v25  ;;  %1975 = vmatpush3.bf16.msra.mxu0 %v1972_v55  ;;  %2009 = vmatpush3.bf16.msra.mxu1 %v1972_v55  ;;  %v1996_v25 = vpack.c.bf16 %v1158_v11, %v1157_v3 }
 0x228   : > { %1977 = vmatprep.subr.bf16.mxu0 %v1976_v16  ;;  %2002 = vmatprep.subr.bf16.mxu1 %v1976_v16 }
 0x229   : > { %1453 = vadd.xlane.f32.xlu1 %v1422_v54  ;;  %1814 = vmatmul.mubr.f32.gmra.mrb[30].mxu0 %v958_v46 }
 0x22b   : > { %1979 = vmatpush3.bf16.msra.mxu0 %v1976_v16  ;;  %2010 = vmatpush3.bf16.msra.mxu1 %v1976_v16 }
 0x22c   : > { %1981 = vmatprep.subr.bf16.mxu0 %v1980_v35  ;;  %2003 = vmatprep.subr.bf16.mxu1 %v1980_v35 }
 0x22f   : > { %1983 = vmatpush3.bf16.msra.mxu0 %v1980_v35  ;;  %2011 = vmatpush3.bf16.msra.mxu1 %v1980_v35 }
 0x230   : > { %1985 = vmatprep.subr.bf16.mxu0 %v1984_v38  ;;  %2004 = vmatprep.subr.bf16.mxu1 %v1984_v38 }
 0x233   : > { %1987 = vmatpush3.bf16.msra.mxu0 %v1984_v38  ;;  %2012 = vmatpush3.bf16.msra.mxu1 %v1984_v38 }
 0x234   : > { %1989 = vmatprep.subr.bf16.mxu0 %v1988_v47  ;;  %2005 = vmatprep.subr.bf16.mxu1 %v1988_v47 }
 0x237   : > { %1991 = vmatpush3.bf16.msra.mxu0 %v1988_v47  ;;  %2013 = vmatpush3.bf16.msra.mxu1 %v1988_v47 }
 0x238   : > { %1993 = vmatprep.subr.bf16.mxu0 %v1992_v22  ;;  %2006 = vmatprep.subr.bf16.mxu1 %v1992_v22 }
 0x23b   : > { %1995 = vmatpush3.bf16.msra.mxu0 %v1992_v22  ;;  %2014 = vmatpush3.bf16.msra.mxu1 %v1992_v22 }
 0x23c   : > { %1997 = vmatprep.subr.bf16.mxu0 %v1996_v25  ;;  %2007 = vmatprep.subr.bf16.mxu1 %v1996_v25 }
 0x23f   : > { %1999 = vmatpush3.bf16.msra.mxu0 %v1996_v25  ;;  %2015 = vmatpush3.bf16.msra.mxu1 %v1996_v25 }
 0x27a   : > { %v1424_v17 = vpop.xlane.xlu0 %1423 }
 0x27b   : > { %v1455_v29 = vmul.f32 -0.5, %v1424_v17 }
 0x27d   : > { %1472 = vst.msk [vmem:[%s2680_s25] sm:$0xff] %vm1471_vm0, %v1455_v29 }
 0x27e   : > { %v1426_v39 = vpop.xlane.xlu0 %1425 }
 0x27f   : > { %v1456_v52 = vmul.f32 -0.5, %v1426_v39 }
 0x281   : > { %1473 = vst.msk [vmem:[%s2680_s25 + $0x8] sm:$0xff] %vm1471_vm0, %v1456_v52 }
 0x282   : > { %v1428_v45 = vpop.xlane.xlu1 %1427 }
 0x283   : > { %v1457_v56 = vmul.f32 -0.5, %v1428_v45 }
 0x285   : > { %1474 = vst.msk [vmem:[%s2680_s25 + $0x10] sm:$0xff] %vm1471_vm0, %v1457_v56 }
 0x286   : > { %v1430_v53 = vpop.xlane.xlu1 %1429 }
 0x287   : > { %v1458_v58 = vmul.f32 -0.5, %v1430_v53 }
 0x289   : > { %1475 = vst.msk [vmem:[%s2680_s25 + $0x18] sm:$0xff] %vm1471_vm0, %v1458_v58 }
 0x28a   : > { %v1432_v59 = vpop.xlane.xlu0 %1431 }
 0x28b   : > { %v1459_v57 = vmul.f32 -0.5, %v1432_v59 }
 0x28d   : > { %1476 = vst.msk [vmem:[%s2680_s25 + $0x20] sm:$0xff] %vm1471_vm0, %v1459_v57 }
 0x28e   : > { %v1434_v40 = vpop.xlane.xlu1 %1433 }
 0x28f   : > { %v1460_v61 = vmul.f32 -0.5, %v1434_v40 }
 0x291   : > { %1477 = vst.msk [vmem:[%s2680_s25 + $0x28] sm:$0xff] %vm1471_vm0, %v1460_v61 }
 0x292   : > { %v1436_v12 = vpop.xlane.xlu0 %1435 }
 0x293   : > { %v1461_v23 = vmul.f32 -0.5, %v1436_v12 }
 0x295   : > { %1478 = vst.msk [vmem:[%s2680_s25 + $0x30] sm:$0xff] %vm1471_vm0, %v1461_v23 }
 0x296   : > { %v1438_v28 = vpop.xlane.xlu1 %1437 }
 0x297   : > { %v1462_v42 = vmul.f32 -0.5, %v1438_v28 }
 0x299   : > { %1479 = vst.msk [vmem:[%s2680_s25 + $0x38] sm:$0xff] %vm1471_vm0, %v1462_v42 }
 0x29a   : > { %v1440_v0 = vpop.xlane.xlu0 %1439 }
 0x29b   : > { %v1463_v26 = vmul.f32 -0.5, %v1440_v0 }
 0x29d   : > { %1480 = vst.msk [vmem:[%s2680_s25 + $0x40] sm:$0xff] %vm1471_vm0, %v1463_v26  ;;  %v1605_v26 = vld [vmem:[%s2754_s9] ss:$0 sm:$0xff] }
 0x29e   : > { %v1442_v8 = vpop.xlane.xlu1 %1441 }
 0x29f   : > { %v1464_v31 = vmul.f32 -0.5, %v1442_v8 }
 0x2a1   : > { %1481 = vst.msk [vmem:[%s2680_s25 + $0x48] sm:$0xff] %vm1471_vm0, %v1464_v31 }
 0x2a2   : > { %v1444_v44 = vpop.xlane.xlu0 %1443 }
 0x2a3   : > { %v1465_v4 = vmul.f32 -0.5, %v1444_v44 }
 0x2a5   : > { %1482 = vst.msk [vmem:[%s2680_s25 + $0x50] sm:$0xff] %vm1471_vm0, %v1465_v4 }
 0x2a6   : > { %v1446_v30 = vpop.xlane.xlu1 %1445 }
 0x2a7   : > { %v1466_v49 = vmul.f32 -0.5, %v1446_v30 }
 0x2a9   : > { %1483 = vst.msk [vmem:[%s2680_s25 + $0x58] sm:$0xff] %vm1471_vm0, %v1466_v49 }
 0x2aa   : > { %v1448_v43 = vpop.xlane.xlu0 %1447 }
 0x2ab   : > { %v1467_v48 = vmul.f32 -0.5, %v1448_v43 }
 0x2ad   : > { %1484 = vst.msk [vmem:[%s2680_s25 + $0x60] sm:$0xff] %vm1471_vm0, %v1467_v48 }
 0x2ae   : > { %v1450_v10 = vpop.xlane.xlu1 %1449 }
 0x2af   : > { %v1468_v60 = vmul.f32 -0.5, %v1450_v10 }
 0x2b1   : > { %1485 = vst.msk [vmem:[%s2680_s25 + $0x68] sm:$0xff] %vm1471_vm0, %v1468_v60 }
 0x2b2   : > { %v1452_v5 = vpop.xlane.xlu0 %1451 }
 0x2b3   : > { %v1469_v9 = vmul.f32 -0.5, %v1452_v5 }
 0x2b5   : > { %1486 = vst.msk [vmem:[%s2680_s25 + $0x70] sm:$0xff] %vm1471_vm0, %v1469_v9 }
 0x2b6   : > { %v1454_v13 = vpop.xlane.xlu1 %1453 }
 0x2b7   : > { %v1470_v15 = vmul.f32 -0.5, %v1454_v13 }
 0x2b9   : > { %1487 = vst.msk [vmem:[%s2680_s25 + $0x78] sm:$0xff] %vm1471_vm0, %v1470_v15 }
 0x2c6   : > { %v1794_v14 = vpop.f32.mrb[16].mxu0 }
 0x2c7   : > { %v1054_v19 = vadd.f32 %v1794_v14, %v1604_v18  ;;  %v1048_v20 = vpop.f32.mrb[17].mxu0 }
 0x2c8   : > { %v1049_v21 = vadd.f32 %v1604_v18, %v1048_v20 }
 0x2c9   : > { %v1128_v54 = vmax.f32 %v1054_v19, 0.0 }
 0x2ca   : > { %v1127_v24 = vmax.f32 %v1049_v21, 0.0 }
 0x2cc   : > { %1848 = vmatprep.mubr.f32.mxu0 %v1127_v24 }
 0x2cd   : > { %1849 = vmatmul.mubr.f32.vlgmr.msra.gmra.mrb[32].mxu0 %v1128_v54 }
 0x2ce   : > { %v1797_v46 = vpop.f32.mrb[18].mxu0 }
 0x2cf   : > { %v1064_v36 = vadd.f32 %v1797_v46, %v1604_v18  ;;  %v1058_v51 = vpop.f32.mrb[19].mxu0 }
 0x2d0   : > { %v1059_v62 = vadd.f32 %v1604_v18, %v1058_v51 }
 0x2d1   : > { %v1130_v50 = vmax.f32 %v1064_v36, 0.0 }
 0x2d2   : > { %v1129_v27 = vmax.f32 %v1059_v62, 0.0 }
 0x2d4   : > { %1851 = vmatprep.mubr.f32.mxu0 %v1129_v27 }
 0x2d5   : > { %1852 = vmatmul.mubr.f32.gmra.mrb[34].mxu0 %v1130_v50 }
 0x2d6   : > { %v1800_v55 = vpop.f32.mrb[20].mxu0 }
 0x2d7   : > { %v1074_v2 = vadd.f32 %v1800_v55, %v1604_v18  ;;  %v1068_v6 = vpop.f32.mrb[21].mxu0 }
 0x2d8   : > { %v1069_v16 = vadd.f32 %v1604_v18, %v1068_v6 }
 0x2d9   : > { %v1132_v34 = vmax.f32 %v1074_v2, 0.0 }
 0x2da   : > { %v1131_v32 = vmax.f32 %v1069_v16, 0.0 }
 0x2dc   : > { %1854 = vmatprep.mubr.f32.mxu0 %v1131_v32 }
 0x2dd   : > { %1855 = vmatmul.mubr.f32.gmra.mrb[36].mxu0 %v1132_v34 }
 0x2de   : > { %v1803_v35 = vpop.f32.mrb[22].mxu0 }
 0x2df   : > { %v1084_v33 = vadd.f32 %v1803_v35, %v1604_v18  ;;  %v1078_v37 = vpop.f32.mrb[23].mxu0 }
 0x2e0   : > { %v1079_v41 = vadd.f32 %v1604_v18, %v1078_v37 }
 0x2e1   : > { %v1134_v1 = vmax.f32 %v1084_v33, 0.0 }
 0x2e2   : > { %v1133_v38 = vmax.f32 %v1079_v41, 0.0 }
 0x2e4   : > { %1857 = vmatprep.mubr.f32.mxu0 %v1133_v38 }
 0x2e5   : > { %1858 = vmatmul.mubr.f32.gmra.mrb[38].mxu0 %v1134_v1 }
 0x2e6   : > { %v1806_v47 = vpop.f32.mrb[24].mxu0 }
 0x2e7   : > { %v1094_v63 = vadd.f32 %v1806_v47, %v1604_v18  ;;  %v1088_v7 = vpop.f32.mrb[25].mxu0 }
 0x2e8   : > { %v1089_v22 = vadd.f32 %v1604_v18, %v1088_v7 }
 0x2e9   : > { %v1136_v11 = vmax.f32 %v1094_v63, 0.0 }
 0x2ea   : > { %v1135_v3 = vmax.f32 %v1089_v22, 0.0 }
 0x2ec   : > { %1860 = vmatprep.mubr.f32.mxu1 %v1135_v3  ;;  %v1809_v25 = vpop.f32.mrb[26].mxu0 }
 0x2ed   : > { %1861 = vmatmul.mubr.f32.vlgmr.msra.gmra.mrb[32].mxu1 %v1136_v11  ;;  %v1104_v17 = vadd.f32 %v1809_v25, %v1604_v18  ;;  %v1098_v29 = vpop.f32.mrb[27].mxu0 }
 0x2ee   : > { %v1099_v39 = vadd.f32 %v1604_v18, %v1098_v29 }
 0x2ef   : > { %v1138_v45 = vmax.f32 %v1104_v17, 0.0 }
 0x2f0   : > { %v1137_v52 = vmax.f32 %v1099_v39, 0.0 }
 0x2f2   : > { %1863 = vmatprep.mubr.f32.mxu1 %v1137_v52 }
 0x2f3   : > { %1864 = vmatmul.mubr.f32.gmra.mrb[34].mxu1 %v1138_v45 }
 0x2f4   : > { %v1812_v56 = vpop.f32.mrb[28].mxu0 }
 0x2f5   : > { %v1114_v53 = vadd.f32 %v1812_v56, %v1604_v18  ;;  %v1108_v58 = vpop.f32.mrb[29].mxu0 }
 0x2f6   : > { %v1109_v59 = vadd.f32 %v1604_v18, %v1108_v58 }
 0x2f7   : > { %v1140_v40 = vmax.f32 %v1114_v53, 0.0 }
 0x2f8   : > { %v1139_v57 = vmax.f32 %v1109_v59, 0.0 }
 0x2fa   : > { %1866 = vmatprep.mubr.f32.mxu1 %v1139_v57 }
 0x2fb   : > { %1867 = vmatmul.mubr.f32.gmra.mrb[36].mxu1 %v1140_v40 }
 0x2fc   : > { %v1815_v61 = vpop.f32.mrb[30].mxu0 }
 0x2fd   : > { %v1124_v12 = vadd.f32 %v1815_v61, %v1604_v18  ;;  %v1118_v23 = vpop.f32.mrb[31].mxu0 }
 0x2fe   : > { %v1119_v28 = vadd.f32 %v1604_v18, %v1118_v23 }
 0x2ff   : > { %v1142_v0 = vmax.f32 %v1124_v12, 0.0 }
 0x300   : > { %v1141_v42 = vmax.f32 %v1119_v28, 0.0 }
 0x302   : > { %1869 = vmatprep.mubr.f32.mxu1 %v1141_v42 }
 0x303   : > { %1870 = vmatmul.mubr.f32.gmra.mrb[38].mxu1 %v1142_v0 }
 0x3a0   : > { %v1850_v8 = vpop.f32.mrb[32].mxu0 }
 0x3a1   : > { %v1238_v31 = vadd.f32 %v1850_v8, %v1605_v26  ;;  %v1232_v44 = vpop.f32.mrb[33].mxu0 }
 0x3a2   : > { %v1233_v4 = vadd.f32 %v1605_v26, %v1232_v44 }
 0x3a3   : > { %v1312_v30 = vmax.f32 %v1238_v31, 0.0 }
 0x3a4   : > { %v1311_v49 = vmax.f32 %v1233_v4, 0.0 }
 0x3a5   : > { %1328 = vst [vmem:[%s2724_s14 + $0x8] sm:$0xff] %v1312_v30 }
 0x3a6   : > { %1327 = vst [vmem:[%s2724_s14] sm:$0xff] %v1311_v49 }
 0x3a8   : > { %v1853_v43 = vpop.f32.mrb[34].mxu0 }
 0x3a9   : > { %v1248_v48 = vadd.f32 %v1853_v43, %v1605_v26  ;;  %v1242_v10 = vpop.f32.mrb[35].mxu0 }
 0x3aa   : > { %v1243_v60 = vadd.f32 %v1605_v26, %v1242_v10 }
 0x3ab   : > { %v1314_v5 = vmax.f32 %v1248_v48, 0.0 }
 0x3ac   : > { %v1313_v9 = vmax.f32 %v1243_v60, 0.0 }
 0x3ad   : > { %1330 = vst [vmem:[%s2724_s14 + $0x18] sm:$0xff] %v1314_v5 }
 0x3ae   : > { %1329 = vst [vmem:[%s2724_s14 + $0x10] sm:$0xff] %v1313_v9 }
 0x3b0   : > { %v1856_v13 = vpop.f32.mrb[36].mxu0 }
 0x3b1   : > { %v1258_v15 = vadd.f32 %v1856_v13, %v1605_v26  ;;  %v1252_v18 = vpop.f32.mrb[37].mxu0 }
 0x3b2   : > { %v1253_v14 = vadd.f32 %v1605_v26, %v1252_v18 }
 0x3b3   : > { %v1316_v19 = vmax.f32 %v1258_v15, 0.0 }
 0x3b4   : > { %v1315_v20 = vmax.f32 %v1253_v14, 0.0 }
 0x3b5   : > { %1332 = vst [vmem:[%s2724_s14 + $0x28] sm:$0xff] %v1316_v19 }
 0x3b6   : > { %1331 = vst [vmem:[%s2724_s14 + $0x20] sm:$0xff] %v1315_v20 }
 0x3b8   : > { %v1859_v21 = vpop.f32.mrb[38].mxu0 }
 0x3b9   : > { %v1268_v24 = vadd.f32 %v1859_v21, %v1605_v26  ;;  %v1262_v54 = vpop.f32.mrb[39].mxu0 }
 0x3ba   : > { %v1263_v46 = vadd.f32 %v1605_v26, %v1262_v54 }
 0x3bb   : > { %v1318_v36 = vmax.f32 %v1268_v24, 0.0 }
 0x3bc   : > { %v1317_v51 = vmax.f32 %v1263_v46, 0.0 }
 0x3bd   : > { %1334 = vst [vmem:[%s2724_s14 + $0x38] sm:$0xff] %v1318_v36 }
 0x3be   : > { %1333 = vst [vmem:[%s2724_s14 + $0x30] sm:$0xff] %v1317_v51 }
 0x3c0   : > { %v1862_v62 = vpop.f32.mrb[32].mxu1 }
 0x3c1   : > { %v1278_v27 = vadd.f32 %v1862_v62, %v1605_v26  ;;  %v1272_v50 = vpop.f32.mrb[33].mxu1 }
 0x3c2   : > { %v1273_v55 = vadd.f32 %v1605_v26, %v1272_v50 }
 0x3c3   : > { %v1320_v2 = vmax.f32 %v1278_v27, 0.0 }
 0x3c4   : > { %v1319_v6 = vmax.f32 %v1273_v55, 0.0 }
 0x3c5   : > { %1336 = vst [vmem:[%s2724_s14 + $0x48] sm:$0xff] %v1320_v2 }
 0x3c6   : > { %1335 = vst [vmem:[%s2724_s14 + $0x40] sm:$0xff] %v1319_v6  ;;  %v1865_v16 = vpop.f32.mrb[34].mxu1 }
 0x3c7   : > { %v1288_v32 = vadd.f32 %v1865_v16, %v1605_v26  ;;  %v1282_v34 = vpop.f32.mrb[35].mxu1 }
 0x3c8   : > { %v1283_v35 = vadd.f32 %v1605_v26, %v1282_v34 }
 0x3c9   : > { %v1322_v33 = vmax.f32 %v1288_v32, 0.0 }
 0x3ca   : > { %v1321_v37 = vmax.f32 %v1283_v35, 0.0 }
 0x3cb   : > { %1338 = vst [vmem:[%s2724_s14 + $0x58] sm:$0xff] %v1322_v33 }
 0x3cc   : > { %1337 = vst [vmem:[%s2724_s14 + $0x50] sm:$0xff] %v1321_v37 }
 0x3ce   : > { %v1868_v41 = vpop.f32.mrb[36].mxu1 }
 0x3cf   : > { %v1298_v38 = vadd.f32 %v1868_v41, %v1605_v26  ;;  %v1292_v1 = vpop.f32.mrb[37].mxu1 }
 0x3d0   : > { %v1293_v47 = vadd.f32 %v1605_v26, %v1292_v1 }
 0x3d1   : > { %v1324_v63 = vmax.f32 %v1298_v38, 0.0 }
 0x3d2   : > { %v1323_v7 = vmax.f32 %v1293_v47, 0.0 }
 0x3d3   : > { %1340 = vst [vmem:[%s2724_s14 + $0x68] sm:$0xff] %v1324_v63 }
 0x3d4   : > { %1339 = vst [vmem:[%s2724_s14 + $0x60] sm:$0xff] %v1323_v7 }
 0x3d6   : > { %v1871_v22 = vpop.f32.mrb[38].mxu1 }
 0x3d7   : > { %v1308_v3 = vadd.f32 %v1871_v22, %v1605_v26  ;;  %v1302_v11 = vpop.f32.mrb[39].mxu1 }
 0x3d8   : > { %v1303_v25 = vadd.f32 %v1605_v26, %v1302_v11 }
 0x3d9   : > { %v1326_v17 = vmax.f32 %v1308_v3, 0.0 }
 0x3da   : > { %v1325_v29 = vmax.f32 %v1303_v25, 0.0 }
 0x3db   : > { %1342 = vst [vmem:[%s2724_s14 + $0x78] sm:$0xff] %v1326_v17 }
 0x3dc   : > { %1341 = vst [vmem:[%s2724_s14 + $0x70] sm:$0xff] %v1325_v29 }
 0x3dd PF: > { %s22_s17 = sadd.s32 1, %s2063_s17  }
 0x3de   : > { %p19_p4 = scmp.ge.s32.totalorder %s22_s17, 4  }
 0x3e0   :  { %21 = sbr.rel (!%p19_p4) target bundleno = 1 (0x1), region = 105 }

</bundles_post_ra>
